<compile_context>
chip_gen: v7x
topology: tpu7x:2x2x1
jax: 0.10.0
libtpu: 0.0.40
codegen_flags: <defaults>
</compile_context>

<pallas_src>
import functools

import jax
import jax.numpy as jnp
from jax.experimental import pallas as pl
from jax.experimental.pallas import tpu as pltpu

EPS = 1e-5
OUT_PAD = 128          # lane-dense padding of the final (E, 1) output
COMPUTE_DTYPE = jnp.bfloat16


# ----------------------------------------------------------------------------
# Tiling / compiler-param helpers
# ----------------------------------------------------------------------------
def _target_tile():
    """Per-chip tile target (v7x has 64 MiB VMEM -> smaller tiles)."""
    try:
        vmem = pltpu.get_tpu_info().vmem_capacity_bytes
    except Exception:  # pragma: no cover - conservative fallback
        vmem = 64 << 20
    return 512 if vmem >= (96 << 20) else 256


def _pick_tile(n, target=None):
    """Largest 128-multiple <= target that divides n, else n (whole)."""
    if target is None:
        target = _target_tile()
    if n <= target:
        return n
    t = target
    while t >= 128:
        if n % t == 0:
            return t
        t -= 128
    # TODO(synk): pad N/E up to a 128-multiple for large, non-divisible sizes.
    return n


def _compiler_params(dim_sems, resident_bytes):
    limit = int(min(48 << 20, max(16 << 20, 2 * resident_bytes)))
    return pltpu.CompilerParams(dimension_semantics=dim_sems,
                                vmem_limit_bytes=limit)


# ----------------------------------------------------------------------------
# ResidualGCN layer: tiled aggregation + stacked SAGE matmul + BN-folded bias
# ----------------------------------------------------------------------------
def residual_gcn_layer(a, x, w_stacked, b, wres, bres):
    """out = relu(BN(SAGEConv(x))) + residual(x), tiled over (rows, k)."""
    n = a.shape[0]
    cin = x.shape[1]
    cout = w_stacked.shape[1]
    has_res = wres is not None

    tm = _pick_tile(n)
    tk = _pick_tile(n)
    grid = (n // tm, n // tk)

    def kernel(*refs):
        if has_res:
            (a_ref, xk_ref, xi_ref, w_ref, b_ref,
             wres_ref, bres_ref, o_ref, acc_ref) = refs
        else:
            a_ref, xk_ref, xi_ref, w_ref, b_ref, o_ref, acc_ref = refs
        k = pl.program_id(1)

        @pl.when(k == 0)
        def _init():
            acc_ref[...] = jnp.zeros_like(acc_ref)

        # mean aggregation: acc += A[i_tile, k_tile] @ x[k_tile]  (bf16 x bf16)
        acc_ref[...] += jnp.dot(a_ref[...],
                                xk_ref[...].astype(a_ref.dtype),
                                preferred_element_type=jnp.float32)

        @pl.when(k == pl.num_programs(1) - 1)
        def _finish():
            xi = xi_ref[...]                                    # (tm, cin) f32
            # concat([agg, x]) @ [[Wl*s], [Wr*s]]  == agg@Wl' + x@Wr'
            stacked = jnp.concatenate([acc_ref[...], xi],
                                      axis=-1).astype(w_ref.dtype)
            h = jnp.dot(stacked, w_ref[...],
                        preferred_element_type=jnp.float32) + b_ref[...]
            h = jnp.maximum(h, 0.0)
            if has_res:
                res = jnp.dot(xi.astype(wres_ref.dtype), wres_ref[...],
                              preferred_element_type=jnp.float32) + bres_ref[...]
            else:
                res = xi                                        # identity residual
            o_ref[...] = (h + res).astype(o_ref.dtype)

    in_specs = [
        pl.BlockSpec((tm, tk), lambda i, k: (i, k)),            # A tile (bf16)
        pl.BlockSpec((tk, cin), lambda i, k: (k, 0)),           # x rows for agg
        pl.BlockSpec((tm, cin), lambda i, k: (i, 0)),           # x rows for lin_r/res
        pl.BlockSpec((2 * cin, cout), lambda i, k: (0, 0)),     # stacked W (bf16)
        pl.BlockSpec((1, cout), lambda i, k: (0, 0)),           # folded bias (f32)
    ]
    inputs = [a, x, x, w_stacked, b]
    if has_res:
        in_specs += [pl.BlockSpec((cin, cout), lambda i, k: (0, 0)),
                     pl.BlockSpec((1, cout), lambda i, k: (0, 0))]
        inputs += [wres, bres]

    resident = (2 * (tm * tk * a.dtype.itemsize + tk * cin * 4 + tm * cin * 4
                     + 2 * cin * cout * 2 + cout * 4
                     + (cin * cout * 2 + cout * 4 if has_res else 0)
                     + tm * cout * 4)
                + tm * cin * 4)
    flops = (2 * n * n * cin + 2 * n * (2 * cin) * cout
             + (2 * n * cin * cout if has_res else 0))
    bytes_accessed = (a.size * a.dtype.itemsize
                      + (grid[0] + 1) * x.size * x.dtype.itemsize
                      + w_stacked.size * 2 + n * cout * 4)

    return pl.pallas_call(
        kernel,
        out_shape=jax.ShapeDtypeStruct((n, cout), jnp.float32),
        grid_spec=pltpu.PrefetchScalarGridSpec(
            num_scalar_prefetch=0,
            grid=grid,
            in_specs=in_specs,
            out_specs=pl.BlockSpec((tm, cout), lambda i, k: (i, 0)),
            scratch_shapes=[pltpu.VMEM((tm, cin), jnp.float32)],
        ),
        compiler_params=_compiler_params(("parallel", "arbitrary"), resident),
        cost_estimate=pl.CostEstimate(flops=int(flops), transcendentals=0,
                                      bytes_accessed=int(bytes_accessed)),
    )(*inputs)


# ----------------------------------------------------------------------------
# Edge MLP with in-kernel SMEM-index gather of x[src] / x[tgt]
# ----------------------------------------------------------------------------
def edge_mlp(x, src_ids, tgt_ids, mlp_ws):
    w1, b1, w2, b2, w3p, b3p = mlp_ws
    n, hch = x.shape
    e = src_ids.shape[0]
    m = w2.shape[0]

    te = _pick_tile(e, 256)
    grid = (e // te,)

    def kernel(src_ref, tgt_ref, x_ref, w1_ref, b1_ref, w2_ref, b2_ref,
               w3_ref, b3_ref, o_ref, xcat_ref):
        t = pl.program_id(0)
        base = t * te

        # Gather x[src], x[tgt] rows (indices live in SMEM via scalar prefetch)
        # into adjacent lane halves of one scratch -> single stacked W1 matmul.
        def gather(i, carry):
            s = src_ref[base + i]
            g = tgt_ref[base + i]
            xcat_ref[pl.ds(i, 1), :hch] = x_ref[pl.ds(s, 1), :]
            xcat_ref[pl.ds(i, 1), hch:] = x_ref[pl.ds(g, 1), :]
            return carry
        jax.lax.fori_loop(0, te, gather, 0)

        xe = xcat_ref[...].astype(w1_ref.dtype)                 # (te, 2H) bf16
        h1 = jnp.dot(xe, w1_ref[...],
                     preferred_element_type=jnp.float32) + b1_ref[...]
        h1 = jnp.maximum(h1, 0.0)
        # Dropout(p=0.3) is identity in eval mode.
        h2 = jnp.dot(h1.astype(w2_ref.dtype), w2_ref[...],
                     preferred_element_type=jnp.float32) + b2_ref[...]
        h2 = jnp.maximum(h2, 0.0)
        # Lane-dense final store: (te, OUT_PAD), real output in column 0.
        o_ref[...] = (jnp.dot(h2.astype(w3_ref.dtype), w3_ref[...],
                              preferred_element_type=jnp.float32) + b3_ref[...])

    in_specs = [
        pl.BlockSpec((n, hch), lambda t, s_r, t_r: (0, 0)),       # x (f32, resident)
        pl.BlockSpec((2 * hch, m), lambda t, s_r, t_r: (0, 0)),   # W1 (bf16)
        pl.BlockSpec((1, m), lambda t, s_r, t_r: (0, 0)),
        pl.BlockSpec((m, m), lambda t, s_r, t_r: (0, 0)),         # W2 (bf16)
        pl.BlockSpec((1, m), lambda t, s_r, t_r: (0, 0)),
        pl.BlockSpec((m, OUT_PAD), lambda t, s_r, t_r: (0, 0)),   # W3 padded (bf16)
        pl.BlockSpec((1, OUT_PAD), lambda t, s_r, t_r: (0, 0)),
    ]
    out_specs = pl.BlockSpec((te, OUT_PAD), lambda t, s_r, t_r: (t, 0))

    resident = (2 * (n * hch * 4 + 2 * hch * m * 2 + m * 4 + m * m * 2 + m * 4
                     + m * OUT_PAD * 2 + OUT_PAD * 4 + te * OUT_PAD * 4)
                + te * 2 * hch * 4)
    flops = 2 * e * (2 * hch) * m + 2 * e * m * m + 2 * e * m * OUT_PAD
    bytes_accessed = (n * hch * 4 + 2 * e * 4 + (2 * hch * m + m * m) * 2
                      + m * OUT_PAD * 2 + e * OUT_PAD * 4)

    return pl.pallas_call(
        kernel,
        out_shape=jax.ShapeDtypeStruct((e, OUT_PAD), jnp.float32),
        grid_spec=pltpu.PrefetchScalarGridSpec(
            num_scalar_prefetch=2,
            grid=grid,
            in_specs=in_specs,
            out_specs=out_specs,
            scratch_shapes=[pltpu.VMEM((te, 2 * hch), jnp.float32)],
        ),
        compiler_params=_compiler_params(("parallel",), resident),
        cost_estimate=pl.CostEstimate(flops=int(flops), transcendentals=0,
                                      bytes_accessed=int(bytes_accessed)),
    )(src_ids, tgt_ids, x, w1, b1, w2, b2, w3p, b3p)


# ----------------------------------------------------------------------------
# Full forward (jittable; graph glue + weight folding hoisted outside)
# ----------------------------------------------------------------------------
def edge_predictor_res_gcn(x, a_norm, src_ids, tgt_ids, layer_ws, mlp_ws):
    for lp in layer_ws:
        if len(lp) == 4:
            w, b, wres, bres = lp
        else:
            (w, b), wres, bres = lp, None, None
        x = residual_gcn_layer(a_norm, x, w, b, wres, bres)
    out_padded = edge_mlp(x, src_ids, tgt_ids, mlp_ws)
    return out_padded[:, :1]


# ----------------------------------------------------------------------------
# Host-side glue: adjacency + parameter folding (computed once, outside jit)
# ----------------------------------------------------------------------------
def build_mean_adjacency(edge_index, num_nodes):
    """Dense row-normalized adjacency: A[i, j] = 1/deg_in(i) per edge j->i."""
    src, tgt = edge_index[0], edge_index[1]
    a = jnp.zeros((num_nodes, num_nodes), jnp.float32).at[tgt, src].add(1.0)
    deg = a.sum(axis=1, keepdims=True)
    return a / jnp.maximum(deg, 1.0)


def fold_layer_params(p, dtype=COMPUTE_DTYPE):
    """Fold BN (eval) + lin_l bias into a stacked [Wl; Wr] weight."""
    s = p["gamma"] * jax.lax.rsqrt(p["var"] + EPS)               # (1, Cout)
    w_stacked = jnp.concatenate([p["wl"] * s, p["wr"] * s], axis=0).astype(dtype)
    b = ((p["bl"] - p["mean"]) * s + p["beta"]).astype(jnp.float32)
    out = (w_stacked, b)
    if "wres" in p:
        out = out + (p["wres"].astype(dtype), p["bres"].astype(jnp.float32))
    return out


def fold_mlp_params(mp, dtype=COMPUTE_DTYPE, out_pad=OUT_PAD):
    m = mp["w2"].shape[0]
    w3p = jnp.zeros((m, out_pad), jnp.float32).at[:, :1].set(mp["w3"]).astype(dtype)
    b3p = jnp.zeros((1, out_pad), jnp.float32).at[:, :1].set(mp["b3"])
    return (mp["w1"].astype(dtype), mp["b1"].astype(jnp.float32),
            mp["w2"].astype(dtype), mp["b2"].astype(jnp.float32),
            w3p, b3p)


# ----------------------------------------------------------------------------
# Pure-JAX reference (f32, highest precision) for a correctness sanity check
# ----------------------------------------------------------------------------
def reference_forward(x, edge_index, layer_params, mlp_params):
    hp = jax.lax.Precision.HIGHEST
    n = x.shape[0]
    a = build_mean_adjacency(edge_index, n)
    for p in layer_params:
        agg = jnp.dot(a, x, precision=hp)
        h = (jnp.dot(agg, p["wl"], precision=hp) + p["bl"]
             + jnp.dot(x, p["wr"], precision=hp))
        h = (h - p["mean"]) * jax.lax.rsqrt(p["var"] + EPS) * p["gamma"] + p["beta"]
        h = jnp.maximum(h, 0.0)
        if "wres" in p:
            res = jnp.dot(x, p["wres"], precision=hp) + p["bres"]
        else:
            res = x
        x = h + res
    src, tgt = edge_index[0], edge_index[1]
    er = jnp.concatenate([x[src], x[tgt]], axis=1)
    h = jnp.maximum(jnp.dot(er, mlp_params["w1"], precision=hp) + mlp_params["b1"], 0.0)
    h = jnp.maximum(jnp.dot(h, mlp_params["w2"], precision=hp) + mlp_params["b2"], 0.0)
    return jnp.dot(h, mlp_params["w3"], precision=hp) + mlp_params["b3"]


# ----------------------------------------------------------------------------
# Synthetic deterministic parameters
# ----------------------------------------------------------------------------
def make_layer_params(key, cin, cout):
    ks = jax.random.split(key, 9)
    s_in = 1.0 / jnp.sqrt(cin)
    p = {
        "wl": jax.random.uniform(ks[0], (cin, cout), jnp.float32, -s_in, s_in),
        "bl": jax.random.uniform(ks[1], (1, cout), jnp.float32, -s_in, s_in),
        "wr": jax.random.uniform(ks[2], (cin, cout), jnp.float32, -s_in, s_in),
        "gamma": 1.0 + 0.1 * jax.random.normal(ks[3], (1, cout), jnp.float32),
        "beta": 0.1 * jax.random.normal(ks[4], (1, cout), jnp.float32),
        "mean": 0.05 * jax.random.normal(ks[5], (1, cout), jnp.float32),
        "var": 1.0 + 0.1 * jax.random.uniform(ks[6], (1, cout), jnp.float32),
    }
    if cin != cout:  # res_linear exists only when shapes differ (as in the module)
        p["wres"] = jax.random.uniform(ks[7], (cin, cout), jnp.float32, -s_in, s_in)
        p["bres"] = jax.random.uniform(ks[8], (1, cout), jnp.float32, -s_in, s_in)
    return p


def make_mlp_params(key, hidden, mlp_hidden):
    ks = jax.random.split(key, 6)
    s1 = 1.0 / jnp.sqrt(2 * hidden)
    s2 = 1.0 / jnp.sqrt(mlp_hidden)
    return {
        "w1": jax.random.uniform(ks[0], (2 * hidden, mlp_hidden), jnp.float32, -s1, s1),
        "b1": jax.random.uniform(ks[1], (1, mlp_hidden), jnp.float32, -s1, s1),
        "w2": jax.random.uniform(ks[2], (mlp_hidden, mlp_hidden), jnp.float32, -s2, s2),
        "b2": jax.random.uniform(ks[3], (1, mlp_hidden), jnp.float32, -s2, s2),
        "w3": jax.random.uniform(ks[4], (mlp_hidden, 1), jnp.float32, -s2, s2),
        "b3": jax.random.uniform(ks[5], (1, 1), jnp.float32, -s2, s2),
    }


# ----------------------------------------------------------------------------
if __name__ == "__main__":
    IN_CHANNELS = 16
    HIDDEN_CHANNELS = 32
    NUM_LAYERS = 2
    MLP_HIDDEN = 32
    NUM_NODES = 64
    NUM_EDGES = 128

    root = jax.random.PRNGKey(0)
    k_x, k_e, k_p = jax.random.split(root, 3)

    x = jax.random.normal(k_x, (NUM_NODES, IN_CHANNELS), jnp.float32)
    edge_index = jax.random.randint(k_e, (2, NUM_EDGES), 0, NUM_NODES, jnp.int32)

    layer_keys = jax.random.split(k_p, NUM_LAYERS + 1)
    layer_params = [make_layer_params(layer_keys[0], IN_CHANNELS, HIDDEN_CHANNELS)]
    for i in range(1, NUM_LAYERS):
        layer_params.append(
            make_layer_params(layer_keys[i], HIDDEN_CHANNELS, HIDDEN_CHANNELS))
    mlp_params = make_mlp_params(layer_keys[-1], HIDDEN_CHANNELS, MLP_HIDDEN)

    # --- host glue, hoisted out of the per-call jitted path -----------------
    a_norm = build_mean_adjacency(edge_index, NUM_NODES).astype(COMPUTE_DTYPE)
    src_ids = edge_index[0].astype(jnp.int32)
    tgt_ids = edge_index[1].astype(jnp.int32)
    layer_ws = tuple(fold_layer_params(p) for p in layer_params)
    mlp_ws = fold_mlp_params(mlp_params)

    fwd = jax.jit(edge_predictor_res_gcn)
    edge_pred = fwd(x, a_norm, src_ids, tgt_ids, layer_ws, mlp_ws)
    jax.block_until_ready(edge_pred)
    assert edge_pred.shape == (NUM_EDGES, 1)

    # Sanity check vs a pure-JAX f32 HIGHEST-precision reference.
    # (Kernel uses bf16 matmul operands with f32 accumulation -> relaxed tol.)
    ref = reference_forward(x, edge_index, layer_params, mlp_params)
    max_err = float(jnp.max(jnp.abs(edge_pred - ref)))
    scale = float(jnp.max(jnp.abs(ref)))
    assert max_err <= 0.08 * (1.0 + scale), \
        f"mismatch vs reference: abs_err={max_err}, ref_scale={scale}"

    print("KERNEL_OK")
</pallas_src>

<mosaic_0001>
module attributes {stable_mosaic.version = 11 : i64} {
  func.func @kernel(%arg0: i32, %arg1: i32, %arg2: memref<64x64xbf16, #tpu.memory_space<vmem>>, %arg3: memref<64x32xf32, #tpu.memory_space<vmem>>, %arg4: memref<64x32xf32, #tpu.memory_space<vmem>>, %arg5: memref<64x32xbf16, #tpu.memory_space<vmem>>, %arg6: memref<1x32xf32, #tpu.memory_space<vmem>>, %arg7: memref<64x32xf32, #tpu.memory_space<vmem>>, %arg8: memref<64x32xf32, #tpu.memory_space<vmem>>) attributes {dimension_semantics = [#tpu.dimension_semantics<parallel>, #tpu.dimension_semantics<arbitrary>], iteration_bounds = array<i64: 1, 1>, scalar_prefetch = 0 : i64, scratch_operands = 1 : i64, tpu.core_type = #tpu.core_type<tc>, window_params = [{transform_indices = @transform_0, window_bounds = array<i64: 64, 64>}, {transform_indices = @transform_1, window_bounds = array<i64: 64, 32>}, {transform_indices = @transform_2, window_bounds = array<i64: 64, 32>}, {pipeline_mode = #tpu.pipeline_mode<synchronous>, transform_indices = @transform_3, window_bounds = array<i64: 64, 32>}, {pipeline_mode = #tpu.pipeline_mode<synchronous>, transform_indices = @transform_4, window_bounds = array<i64: 1, 32>}, {transform_indices = @transform_5, window_bounds = array<i64: 64, 32>}]} {
    %c0_i32 = arith.constant 0 : i32
    %0 = arith.cmpi eq, %arg1, %c0_i32 : i32
    %1 = arith.extui %0 : i1 to i32
    %c0_i32_0 = arith.constant 0 : i32
    %2 = arith.cmpi ne, %1, %c0_i32_0 : i32
    scf.if %2 {
      %cst_10 = arith.constant 0.000000e+00 : f32
      %13 = vector.broadcast %cst_10 : f32 to vector<64x32xf32>
      %c0_11 = arith.constant 0 : index
      %c0_12 = arith.constant 0 : index
      %14 = vector.load %arg8[%c0_11, %c0_12] : memref<64x32xf32, #tpu.memory_space<vmem>>, vector<64x32xf32>
      tpu.vector_store %arg8[%c0_11, %c0_12], %13 {strides = array<i32>} : memref<64x32xf32, #tpu.memory_space<vmem>>, vector<64x32xf32>,
    } else {
    }
    %c0 = arith.constant 0 : index
    %c0_1 = arith.constant 0 : index
    %3 = vector.load %arg8[%c0, %c0_1] : memref<64x32xf32, #tpu.memory_space<vmem>>, vector<64x32xf32>
    %c0_2 = arith.constant 0 : index
    %c0_3 = arith.constant 0 : index
    %4 = vector.load %arg2[%c0_2, %c0_3] : memref<64x64xbf16, #tpu.memory_space<vmem>>, vector<64x64xbf16>
    %c0_4 = arith.constant 0 : index
    %c0_5 = arith.constant 0 : index
    %5 = vector.load %arg3[%c0_4, %c0_5] : memref<64x32xf32, #tpu.memory_space<vmem>>, vector<64x32xf32>
    %6 = arith.truncf %5 : vector<64x32xf32> to vector<64x32xbf16>
    %cst = arith.constant dense<0.000000e+00> : vector<64x32xf32>
    %7 = tpu.matmul %4, %6, %cst {dimension_numbers = #tpu.dot_dimension_numbers<[1], [0], [0], [1], [0, 0, 1, 1], [], []>} : vector<64x64xbf16>, vector<64x32xbf16>, vector<64x32xf32> -> vector<64x32xf32>
    %8 = arith.addf %3, %7 : vector<64x32xf32>
    %c0_6 = arith.constant 0 : index
    %c0_7 = arith.constant 0 : index
    %9 = vector.load %arg8[%c0_6, %c0_7] : memref<64x32xf32, #tpu.memory_space<vmem>>, vector<64x32xf32>
    tpu.vector_store %arg8[%c0_6, %c0_7], %8 {strides = array<i32>} : memref<64x32xf32, #tpu.memory_space<vmem>>, vector<64x32xf32>,
    %c0_i32_8 = arith.constant 0 : i32
    %10 = arith.cmpi eq, %arg1, %c0_i32_8 : i32
    %11 = arith.extui %10 : i1 to i32
    %c0_i32_9 = arith.constant 0 : i32
    %12 = arith.cmpi ne, %11, %c0_i32_9 : i32
    scf.if %12 {
      %c0_10 = arith.constant 0 : index
      %c0_11 = arith.constant 0 : index
      %13 = vector.load %arg4[%c0_10, %c0_11] : memref<64x32xf32, #tpu.memory_space<vmem>>, vector<64x32xf32>
      %c0_12 = arith.constant 0 : index
      %c0_13 = arith.constant 0 : index
      %14 = vector.load %arg8[%c0_12, %c0_13] : memref<64x32xf32, #tpu.memory_space<vmem>>, vector<64x32xf32>
      %15 = tpu.concatenate %14, %13 in 1 : vector<64x32xf32>, vector<64x32xf32> -> vector<64x64xf32>
      %16 = arith.truncf %15 : vector<64x64xf32> to vector<64x64xbf16>
      %c0_14 = arith.constant 0 : index
      %c0_15 = arith.constant 0 : index
      %17 = vector.load %arg5[%c0_14, %c0_15] : memref<64x32xbf16, #tpu.memory_space<vmem>>, vector<64x32xbf16>
      %cst_16 = arith.constant dense<0.000000e+00> : vector<64x32xf32>
      %18 = tpu.matmul %16, %17, %cst_16 {dimension_numbers = #tpu.dot_dimension_numbers<[1], [0], [0], [1], [0, 0, 1, 1], [], []>} : vector<64x64xbf16>, vector<64x32xbf16>, vector<64x32xf32> -> vector<64x32xf32>
      %c0_17 = arith.constant 0 : index
      %c0_18 = arith.constant 0 : index
      %19 = vector.load %arg6[%c0_17, %c0_18] : memref<1x32xf32, #tpu.memory_space<vmem>>, vector<1x32xf32>
      %20 = vector.broadcast %19 : vector<1x32xf32> to vector<64x32xf32>
      %21 = arith.addf %18, %20 : vector<64x32xf32>
      %cst_19 = arith.constant 0.000000e+00 : f32
      %22 = vector.broadcast %cst_19 : f32 to vector<64x32xf32>
      %23 = arith.maximumf %21, %22 : vector<64x32xf32>
      %24 = arith.addf %23, %13 : vector<64x32xf32>
      %c0_20 = arith.constant 0 : index
      %c0_21 = arith.constant 0 : index
      %25 = vector.load %arg7[%c0_20, %c0_21] : memref<64x32xf32, #tpu.memory_space<vmem>>, vector<64x32xf32>
      tpu.vector_store %arg7[%c0_20, %c0_21], %24 {strides = array<i32>} : memref<64x32xf32, #tpu.memory_space<vmem>>, vector<64x32xf32>,
    } else {
    }
    return
  }
  func.func @transform_0(%arg0: i32, %arg1: i32) -> (i32, i32) {
    %c0_i32 = arith.constant 0 : i32
    return %arg0, %arg1 : i32, i32
  }
  func.func @transform_1(%arg0: i32, %arg1: i32) -> (i32, i32) {
    %c0_i32 = arith.constant 0 : i32
    %c0_i32_0 = arith.constant 0 : i32
    return %arg1, %c0_i32 : i32, i32
  }
  func.func @transform_2(%arg0: i32, %arg1: i32) -> (i32, i32) {
    %c0_i32 = arith.constant 0 : i32
    %c0_i32_0 = arith.constant 0 : i32
    return %arg0, %c0_i32 : i32, i32
  }
  func.func @transform_3(%arg0: i32, %arg1: i32) -> (i32, i32) {
    %c0_i32 = arith.constant 0 : i32
    %c0_i32_0 = arith.constant 0 : i32
    %c0_i32_1 = arith.constant 0 : i32
    return %c0_i32, %c0_i32_0 : i32, i32
  }
  func.func @transform_4(%arg0: i32, %arg1: i32) -> (i32, i32) {
    %c0_i32 = arith.constant 0 : i32
    %c0_i32_0 = arith.constant 0 : i32
    %c0_i32_1 = arith.constant 0 : i32
    return %c0_i32, %c0_i32_0 : i32, i32
  }
  func.func @transform_5(%arg0: i32, %arg1: i32) -> (i32, i32) {
    %c0_i32 = arith.constant 0 : i32
    %c0_i32_0 = arith.constant 0 : i32
    return %arg0, %c0_i32 : i32, i32
  }
}

module attributes {stable_mosaic.version = 11 : i64} {
  func.func @kernel(%arg0: i32, %arg1: i32, %arg2: memref<64x64xbf16, #tpu.memory_space<vmem>>, %arg3: memref<64x16xf32, #tpu.memory_space<vmem>>, %arg4: memref<64x16xf32, #tpu.memory_space<vmem>>, %arg5: memref<32x32xbf16, #tpu.memory_space<vmem>>, %arg6: memref<1x32xf32, #tpu.memory_space<vmem>>, %arg7: memref<16x32xbf16, #tpu.memory_space<vmem>>, %arg8: memref<1x32xf32, #tpu.memory_space<vmem>>, %arg9: memref<64x32xf32, #tpu.memory_space<vmem>>, %arg10: memref<64x16xf32, #tpu.memory_space<vmem>>) attributes {dimension_semantics = [#tpu.dimension_semantics<parallel>, #tpu.dimension_semantics<arbitrary>], iteration_bounds = array<i64: 1, 1>, scalar_prefetch = 0 : i64, scratch_operands = 1 : i64, tpu.core_type = #tpu.core_type<tc>, window_params = [{transform_indices = @transform_0, window_bounds = array<i64: 64, 64>}, {transform_indices = @transform_1, window_bounds = array<i64: 64, 16>}, {transform_indices = @transform_2, window_bounds = array<i64: 64, 16>}, {pipeline_mode = #tpu.pipeline_mode<synchronous>, transform_indices = @transform_3, window_bounds = array<i64: 32, 32>}, {pipeline_mode = #tpu.pipeline_mode<synchronous>, transform_indices = @transform_4, window_bounds = array<i64: 1, 32>}, {pipeline_mode = #tpu.pipeline_mode<synchronous>, transform_indices = @transform_5, window_bounds = array<i64: 16, 32>}, {pipeline_mode = #tpu.pipeline_mode<synchronous>, transform_indices = @transform_6, window_bounds = array<i64: 1, 32>}, {transform_indices = @transform_7, window_bounds = array<i64: 64, 32>}]} {
    %c0_i32 = arith.constant 0 : i32
    %0 = arith.cmpi eq, %arg1, %c0_i32 : i32
    %1 = arith.extui %0 : i1 to i32
    %c0_i32_0 = arith.constant 0 : i32
    %2 = arith.cmpi ne, %1, %c0_i32_0 : i32
    scf.if %2 {
      %cst_10 = arith.constant 0.000000e+00 : f32
      %13 = vector.broadcast %cst_10 : f32 to vector<64x16xf32>
      %c0_11 = arith.constant 0 : index
      %c0_12 = arith.constant 0 : index
      %14 = vector.load %arg10[%c0_11, %c0_12] : memref<64x16xf32, #tpu.memory_space<vmem>>, vector<64x16xf32>
      tpu.vector_store %arg10[%c0_11, %c0_12], %13 {strides = array<i32>} : memref<64x16xf32, #tpu.memory_space<vmem>>, vector<64x16xf32>,
    } else {
    }
    %c0 = arith.constant 0 : index
    %c0_1 = arith.constant 0 : index
    %3 = vector.load %arg10[%c0, %c0_1] : memref<64x16xf32, #tpu.memory_space<vmem>>, vector<64x16xf32>
    %c0_2 = arith.constant 0 : index
    %c0_3 = arith.constant 0 : index
    %4 = vector.load %arg2[%c0_2, %c0_3] : memref<64x64xbf16, #tpu.memory_space<vmem>>, vector<64x64xbf16>
    %c0_4 = arith.constant 0 : index
    %c0_5 = arith.constant 0 : index
    %5 = vector.load %arg3[%c0_4, %c0_5] : memref<64x16xf32, #tpu.memory_space<vmem>>, vector<64x16xf32>
    %6 = arith.truncf %5 : vector<64x16xf32> to vector<64x16xbf16>
    %cst = arith.constant dense<0.000000e+00> : vector<64x16xf32>
    %7 = tpu.matmul %4, %6, %cst {dimension_numbers = #tpu.dot_dimension_numbers<[1], [0], [0], [1], [0, 0, 1, 1], [], []>} : vector<64x64xbf16>, vector<64x16xbf16>, vector<64x16xf32> -> vector<64x16xf32>
    %8 = arith.addf %3, %7 : vector<64x16xf32>
    %c0_6 = arith.constant 0 : index
    %c0_7 = arith.constant 0 : index
    %9 = vector.load %arg10[%c0_6, %c0_7] : memref<64x16xf32, #tpu.memory_space<vmem>>, vector<64x16xf32>
    tpu.vector_store %arg10[%c0_6, %c0_7], %8 {strides = array<i32>} : memref<64x16xf32, #tpu.memory_space<vmem>>, vector<64x16xf32>,
    %c0_i32_8 = arith.constant 0 : i32
    %10 = arith.cmpi eq, %arg1, %c0_i32_8 : i32
    %11 = arith.extui %10 : i1 to i32
    %c0_i32_9 = arith.constant 0 : i32
    %12 = arith.cmpi ne, %11, %c0_i32_9 : i32
    scf.if %12 {
      %c0_10 = arith.constant 0 : index
      %c0_11 = arith.constant 0 : index
      %13 = vector.load %arg4[%c0_10, %c0_11] : memref<64x16xf32, #tpu.memory_space<vmem>>, vector<64x16xf32>
      %c0_12 = arith.constant 0 : index
      %c0_13 = arith.constant 0 : index
      %14 = vector.load %arg10[%c0_12, %c0_13] : memref<64x16xf32, #tpu.memory_space<vmem>>, vector<64x16xf32>
      %15 = tpu.concatenate %14, %13 in 1 : vector<64x16xf32>, vector<64x16xf32> -> vector<64x32xf32>
      %16 = arith.truncf %15 : vector<64x32xf32> to vector<64x32xbf16>
      %c0_14 = arith.constant 0 : index
      %c0_15 = arith.constant 0 : index
      %17 = vector.load %arg5[%c0_14, %c0_15] : memref<32x32xbf16, #tpu.memory_space<vmem>>, vector<32x32xbf16>
      %cst_16 = arith.constant dense<0.000000e+00> : vector<64x32xf32>
      %18 = tpu.matmul %16, %17, %cst_16 {dimension_numbers = #tpu.dot_dimension_numbers<[1], [0], [0], [1], [0, 0, 1, 1], [], []>} : vector<64x32xbf16>, vector<32x32xbf16>, vector<64x32xf32> -> vector<64x32xf32>
      %c0_17 = arith.constant 0 : index
      %c0_18 = arith.constant 0 : index
      %19 = vector.load %arg6[%c0_17, %c0_18] : memref<1x32xf32, #tpu.memory_space<vmem>>, vector<1x32xf32>
      %20 = vector.broadcast %19 : vector<1x32xf32> to vector<64x32xf32>
      %21 = arith.addf %18, %20 : vector<64x32xf32>
      %cst_19 = arith.constant 0.000000e+00 : f32
      %22 = vector.broadcast %cst_19 : f32 to vector<64x32xf32>
      %23 = arith.maximumf %21, %22 : vector<64x32xf32>
      %24 = arith.truncf %13 : vector<64x16xf32> to vector<64x16xbf16>
      %c0_20 = arith.constant 0 : index
      %c0_21 = arith.constant 0 : index
      %25 = vector.load %arg7[%c0_20, %c0_21] : memref<16x32xbf16, #tpu.memory_space<vmem>>, vector<16x32xbf16>
      %cst_22 = arith.constant dense<0.000000e+00> : vector<64x32xf32>
      %26 = tpu.matmul %24, %25, %cst_22 {dimension_numbers = #tpu.dot_dimension_numbers<[1], [0], [0], [1], [0, 0, 1, 1], [], []>} : vector<64x16xbf16>, vector<16x32xbf16>, vector<64x32xf32> -> vector<64x32xf32>
      %c0_23 = arith.constant 0 : index
      %c0_24 = arith.constant 0 : index
      %27 = vector.load %arg8[%c0_23, %c0_24] : memref<1x32xf32, #tpu.memory_space<vmem>>, vector<1x32xf32>
      %28 = vector.broadcast %27 : vector<1x32xf32> to vector<64x32xf32>
      %29 = arith.addf %26, %28 : vector<64x32xf32>
      %30 = arith.addf %23, %29 : vector<64x32xf32>
      %c0_25 = arith.constant 0 : index
      %c0_26 = arith.constant 0 : index
      %31 = vector.load %arg9[%c0_25, %c0_26] : memref<64x32xf32, #tpu.memory_space<vmem>>, vector<64x32xf32>
      tpu.vector_store %arg9[%c0_25, %c0_26], %30 {strides = array<i32>} : memref<64x32xf32, #tpu.memory_space<vmem>>, vector<64x32xf32>,
    } else {
    }
    return
  }
  func.func @transform_0(%arg0: i32, %arg1: i32) -> (i32, i32) {
    %c0_i32 = arith.constant 0 : i32
    return %arg0, %arg1 : i32, i32
  }
  func.func @transform_1(%arg0: i32, %arg1: i32) -> (i32, i32) {
    %c0_i32 = arith.constant 0 : i32
    %c0_i32_0 = arith.constant 0 : i32
    return %arg1, %c0_i32 : i32, i32
  }
  func.func @transform_2(%arg0: i32, %arg1: i32) -> (i32, i32) {
    %c0_i32 = arith.constant 0 : i32
    %c0_i32_0 = arith.constant 0 : i32
    return %arg0, %c0_i32 : i32, i32
  }
  func.func @transform_3(%arg0: i32, %arg1: i32) -> (i32, i32) {
    %c0_i32 = arith.constant 0 : i32
    %c0_i32_0 = arith.constant 0 : i32
    %c0_i32_1 = arith.constant 0 : i32
    return %c0_i32, %c0_i32_0 : i32, i32
  }
  func.func @transform_4(%arg0: i32, %arg1: i32) -> (i32, i32) {
    %c0_i32 = arith.constant 0 : i32
    %c0_i32_0 = arith.constant 0 : i32
    %c0_i32_1 = arith.constant 0 : i32
    return %c0_i32, %c0_i32_0 : i32, i32
  }
  func.func @transform_5(%arg0: i32, %arg1: i32) -> (i32, i32) {
    %c0_i32 = arith.constant 0 : i32
    %c0_i32_0 = arith.constant 0 : i32
    %c0_i32_1 = arith.constant 0 : i32
    return %c0_i32, %c0_i32_0 : i32, i32
  }
  func.func @transform_6(%arg0: i32, %arg1: i32) -> (i32, i32) {
    %c0_i32 = arith.constant 0 : i32
    %c0_i32_0 = arith.constant 0 : i32
    %c0_i32_1 = arith.constant 0 : i32
    return %c0_i32, %c0_i32_0 : i32, i32
  }
  func.func @transform_7(%arg0: i32, %arg1: i32) -> (i32, i32) {
    %c0_i32 = arith.constant 0 : i32
    %c0_i32_0 = arith.constant 0 : i32
    return %arg0, %c0_i32 : i32, i32
  }
}

module attributes {stable_mosaic.version = 11 : i64} {
  func.func @kernel(%arg0: i32, %arg1: memref<128xi32, #tpu.memory_space<smem>>, %arg2: memref<128xi32, #tpu.memory_space<smem>>, %arg3: memref<64x32xf32, #tpu.memory_space<vmem>>, %arg4: memref<64x32xbf16, #tpu.memory_space<vmem>>, %arg5: memref<1x32xf32, #tpu.memory_space<vmem>>, %arg6: memref<32x32xbf16, #tpu.memory_space<vmem>>, %arg7: memref<1x32xf32, #tpu.memory_space<vmem>>, %arg8: memref<32x128xbf16, #tpu.memory_space<vmem>>, %arg9: memref<1x128xf32, #tpu.memory_space<vmem>>, %arg10: memref<128x128xf32, #tpu.memory_space<vmem>>, %arg11: memref<128x64xf32, #tpu.memory_space<vmem>>) attributes {dimension_semantics = [#tpu.dimension_semantics<parallel>], iteration_bounds = array<i64: 1>, scalar_prefetch = 2 : i64, scratch_operands = 1 : i64, tpu.core_type = #tpu.core_type<tc>, window_params = [{pipeline_mode = #tpu.pipeline_mode<synchronous>, transform_indices = @transform_0, window_bounds = array<i64: 64, 32>}, {pipeline_mode = #tpu.pipeline_mode<synchronous>, transform_indices = @transform_1, window_bounds = array<i64: 64, 32>}, {pipeline_mode = #tpu.pipeline_mode<synchronous>, transform_indices = @transform_2, window_bounds = array<i64: 1, 32>}, {pipeline_mode = #tpu.pipeline_mode<synchronous>, transform_indices = @transform_3, window_bounds = array<i64: 32, 32>}, {pipeline_mode = #tpu.pipeline_mode<synchronous>, transform_indices = @transform_4, window_bounds = array<i64: 1, 32>}, {pipeline_mode = #tpu.pipeline_mode<synchronous>, transform_indices = @transform_5, window_bounds = array<i64: 32, 128>}, {pipeline_mode = #tpu.pipeline_mode<synchronous>, transform_indices = @transform_6, window_bounds = array<i64: 1, 128>}, {transform_indices = @transform_7, window_bounds = array<i64: 128, 128>}]} {
    %c128_i32 = arith.constant 128 : i32
    %0 = arith.muli %arg0, %c128_i32 : i32
    %c0_i32 = arith.constant 0 : i32
    %c128_i32_0 = arith.constant 128 : i32
    %1 = arith.addi %c0_i32, %c128_i32_0 : i32
    %c1_i32 = arith.constant 1 : i32
    scf.for %arg12 = %c0_i32 to %1 step %c1_i32  : i32 {
      %26 = arith.addi %0, %arg12 : i32
      %27 = arith.index_cast %26 : i32 to index
      %28 = memref.load %arg1[%27] : memref<128xi32, #tpu.memory_space<smem>>
      %29 = arith.addi %0, %arg12 : i32
      %30 = arith.index_cast %29 : i32 to index
      %31 = memref.load %arg2[%30] : memref<128xi32, #tpu.memory_space<smem>>
      %32 = arith.index_cast %28 : i32 to index
      %c0_21 = arith.constant 0 : index
      %33 = vector.load %arg3[%32, %c0_21] : memref<64x32xf32, #tpu.memory_space<vmem>>, vector<1x32xf32>
      %34 = arith.index_cast %arg12 : i32 to index
      %c0_22 = arith.constant 0 : index
      %35 = vector.load %arg11[%34, %c0_22] : memref<128x64xf32, #tpu.memory_space<vmem>>, vector<1x32xf32>
      tpu.vector_store %arg11[%34, %c0_22], %33 {strides = array<i32>} : memref<128x64xf32, #tpu.memory_space<vmem>>, vector<1x32xf32>,
      %36 = arith.index_cast %31 : i32 to index
      %c0_23 = arith.constant 0 : index
      %37 = vector.load %arg3[%36, %c0_23] : memref<64x32xf32, #tpu.memory_space<vmem>>, vector<1x32xf32>
      %38 = arith.index_cast %arg12 : i32 to index
      %c32 = arith.constant 32 : index
      %39 = vector.load %arg11[%38, %c32] : memref<128x64xf32, #tpu.memory_space<vmem>>, vector<1x32xf32>
      tpu.vector_store %arg11[%38, %c32], %37 {strides = array<i32>} : memref<128x64xf32, #tpu.memory_space<vmem>>, vector<1x32xf32>,
    }
    %c128_i32_1 = arith.constant 128 : i32
    %c0 = arith.constant 0 : index
    %c0_2 = arith.constant 0 : index
    %2 = vector.load %arg11[%c0, %c0_2] : memref<128x64xf32, #tpu.memory_space<vmem>>, vector<128x64xf32>
    %3 = arith.truncf %2 : vector<128x64xf32> to vector<128x64xbf16>
    %c0_3 = arith.constant 0 : index
    %c0_4 = arith.constant 0 : index
    %4 = vector.load %arg4[%c0_3, %c0_4] : memref<64x32xbf16, #tpu.memory_space<vmem>>, vector<64x32xbf16>
    %cst = arith.constant dense<0.000000e+00> : vector<128x32xf32>
    %5 = tpu.matmul %3, %4, %cst {dimension_numbers = #tpu.dot_dimension_numbers<[1], [0], [0], [1], [0, 0, 1, 1], [], []>} : vector<128x64xbf16>, vector<64x32xbf16>, vector<128x32xf32> -> vector<128x32xf32>
    %c0_5 = arith.constant 0 : index
    %c0_6 = arith.constant 0 : index
    %6 = vector.load %arg5[%c0_5, %c0_6] : memref<1x32xf32, #tpu.memory_space<vmem>>, vector<1x32xf32>
    %7 = vector.broadcast %6 : vector<1x32xf32> to vector<128x32xf32>
    %8 = arith.addf %5, %7 : vector<128x32xf32>
    %cst_7 = arith.constant 0.000000e+00 : f32
    %9 = vector.broadcast %cst_7 : f32 to vector<128x32xf32>
    %10 = arith.maximumf %8, %9 : vector<128x32xf32>
    %11 = arith.truncf %10 : vector<128x32xf32> to vector<128x32xbf16>
    %c0_8 = arith.constant 0 : index
    %c0_9 = arith.constant 0 : index
    %12 = vector.load %arg6[%c0_8, %c0_9] : memref<32x32xbf16, #tpu.memory_space<vmem>>, vector<32x32xbf16>
    %cst_10 = arith.constant dense<0.000000e+00> : vector<128x32xf32>
    %13 = tpu.matmul %11, %12, %cst_10 {dimension_numbers = #tpu.dot_dimension_numbers<[1], [0], [0], [1], [0, 0, 1, 1], [], []>} : vector<128x32xbf16>, vector<32x32xbf16>, vector<128x32xf32> -> vector<128x32xf32>
    %c0_11 = arith.constant 0 : index
    %c0_12 = arith.constant 0 : index
    %14 = vector.load %arg7[%c0_11, %c0_12] : memref<1x32xf32, #tpu.memory_space<vmem>>, vector<1x32xf32>
    %15 = vector.broadcast %14 : vector<1x32xf32> to vector<128x32xf32>
    %16 = arith.addf %13, %15 : vector<128x32xf32>
    %cst_13 = arith.constant 0.000000e+00 : f32
    %17 = vector.broadcast %cst_13 : f32 to vector<128x32xf32>
    %18 = arith.maximumf %16, %17 : vector<128x32xf32>
    %19 = arith.truncf %18 : vector<128x32xf32> to vector<128x32xbf16>
    %c0_14 = arith.constant 0 : index
    %c0_15 = arith.constant 0 : index
    %20 = vector.load %arg8[%c0_14, %c0_15] : memref<32x128xbf16, #tpu.memory_space<vmem>>, vector<32x128xbf16>
    %cst_16 = arith.constant dense<0.000000e+00> : vector<128x128xf32>
    %21 = tpu.matmul %19, %20, %cst_16 {dimension_numbers = #tpu.dot_dimension_numbers<[1], [0], [0], [1], [0, 0, 1, 1], [], []>} : vector<128x32xbf16>, vector<32x128xbf16>, vector<128x128xf32> -> vector<128x128xf32>
    %c0_17 = arith.constant 0 : index
    %c0_18 = arith.constant 0 : index
    %22 = vector.load %arg9[%c0_17, %c0_18] : memref<1x128xf32, #tpu.memory_space<vmem>>, vector<1x128xf32>
    %23 = vector.broadcast %22 : vector<1x128xf32> to vector<128x128xf32>
    %24 = arith.addf %21, %23 : vector<128x128xf32>
    %c0_19 = arith.constant 0 : index
    %c0_20 = arith.constant 0 : index
    %25 = vector.load %arg10[%c0_19, %c0_20] : memref<128x128xf32, #tpu.memory_space<vmem>>, vector<128x128xf32>
    tpu.vector_store %arg10[%c0_19, %c0_20], %24 {strides = array<i32>} : memref<128x128xf32, #tpu.memory_space<vmem>>, vector<128x128xf32>,
    return
  }
  func.func @transform_0(%arg0: i32, %arg1: memref<128xi32, #tpu.memory_space<smem>>, %arg2: memref<128xi32, #tpu.memory_space<smem>>) -> (i32, i32) {
    %c0_i32 = arith.constant 0 : i32
    %c0_i32_0 = arith.constant 0 : i32
    %c0_i32_1 = arith.constant 0 : i32
    return %c0_i32, %c0_i32_0 : i32, i32
  }
  func.func @transform_1(%arg0: i32, %arg1: memref<128xi32, #tpu.memory_space<smem>>, %arg2: memref<128xi32, #tpu.memory_space<smem>>) -> (i32, i32) {
    %c0_i32 = arith.constant 0 : i32
    %c0_i32_0 = arith.constant 0 : i32
    %c0_i32_1 = arith.constant 0 : i32
    return %c0_i32, %c0_i32_0 : i32, i32
  }
  func.func @transform_2(%arg0: i32, %arg1: memref<128xi32, #tpu.memory_space<smem>>, %arg2: memref<128xi32, #tpu.memory_space<smem>>) -> (i32, i32) {
    %c0_i32 = arith.constant 0 : i32
    %c0_i32_0 = arith.constant 0 : i32
    %c0_i32_1 = arith.constant 0 : i32
    return %c0_i32, %c0_i32_0 : i32, i32
  }
  func.func @transform_3(%arg0: i32, %arg1: memref<128xi32, #tpu.memory_space<smem>>, %arg2: memref<128xi32, #tpu.memory_space<smem>>) -> (i32, i32) {
    %c0_i32 = arith.constant 0 : i32
    %c0_i32_0 = arith.constant 0 : i32
    %c0_i32_1 = arith.constant 0 : i32
    return %c0_i32, %c0_i32_0 : i32, i32
  }
  func.func @transform_4(%arg0: i32, %arg1: memref<128xi32, #tpu.memory_space<smem>>, %arg2: memref<128xi32, #tpu.memory_space<smem>>) -> (i32, i32) {
    %c0_i32 = arith.constant 0 : i32
    %c0_i32_0 = arith.constant 0 : i32
    %c0_i32_1 = arith.constant 0 : i32
    return %c0_i32, %c0_i32_0 : i32, i32
  }
  func.func @transform_5(%arg0: i32, %arg1: memref<128xi32, #tpu.memory_space<smem>>, %arg2: memref<128xi32, #tpu.memory_space<smem>>) -> (i32, i32) {
    %c0_i32 = arith.constant 0 : i32
    %c0_i32_0 = arith.constant 0 : i32
    %c0_i32_1 = arith.constant 0 : i32
    return %c0_i32, %c0_i32_0 : i32, i32
  }
  func.func @transform_6(%arg0: i32, %arg1: memref<128xi32, #tpu.memory_space<smem>>, %arg2: memref<128xi32, #tpu.memory_space<smem>>) -> (i32, i32) {
    %c0_i32 = arith.constant 0 : i32
    %c0_i32_0 = arith.constant 0 : i32
    %c0_i32_1 = arith.constant 0 : i32
    return %c0_i32, %c0_i32_0 : i32, i32
  }
  func.func @transform_7(%arg0: i32, %arg1: memref<128xi32, #tpu.memory_space<smem>>, %arg2: memref<128xi32, #tpu.memory_space<smem>>) -> (i32, i32) {
    %c0_i32 = arith.constant 0 : i32
    %c0_i32_0 = arith.constant 0 : i32
    return %arg0, %c0_i32 : i32, i32
  }
}

</mosaic_0001>

<bundles_post_ra>
// kernel: edge_predictor_res_gcn.3
= control target key start
LH: loop header
LB: loop body
LE: loop exit
PB: predicated region body
PF: predicated region fallthrough
CT: control target
= control target key end

     0   :  { %vm31_vm0 = vcmask 130048   ;;  %v578_v3 = vmov 0.0   ;;  %vm88_vm1 = vcmask 523264   ;;  %s579_s11 = smov 16   ;;  %vm269_vm2 = vcmask 261120   ;;  %s807_s1 = inlined_call_operand.vmem [shape: f32[64,16], index: 1, kind: input, shape index: {}, may-alias: {1,2}]   ;;  %s808_s0 = inlined_call_operand.vmem [shape: bf16[64,64], index: 0, kind: input, shape index: {}]   ;;  %s809_s2 = inlined_call_operand.vmem [shape: f32[64,16], index: 2, kind: input, shape index: {}, may-alias: {1,2}]   ;;  %s810_s3 = inlined_call_operand.vmem [shape: bf16[32,32], index: 3, kind: input, shape index: {}]   ;;  %s811_s5 = inlined_call_operand.vmem [shape: bf16[16,32], index: 5, kind: input, shape index: {}]   ;;  %s812_s4 = inlined_call_operand.vmem [shape: f32[1,32], index: 4, kind: input, shape index: {}]   ;;  %s813_s6 = inlined_call_operand.vmem [shape: f32[1,32], index: 6, kind: input, shape index: {}]   ;;  %s814_s7 = inlined_call_operand.vmem [shape: f32[64,32], index: 7, kind: output, shape index: {}]  }
   0x1   :  { %v56_v0 = vld [vmem:[%s807_s1] sm:$0xff]  ;;  %v57_v1 = vld [vmem:[%s807_s1 + $0x8] sm:$0xff]  ;;  %v58_v2 = vld [vmem:[%s807_s1 + $0x10] sm:$0xff]  ;;  %34 = vst.msk [vmem:[#allocation2 + $0x10] sm:$0xff] %vm31_vm0, %v578_v3 }
   0x2   :  { %32 = vst.msk [vmem:[#allocation2] sm:$0xff] %vm31_vm0, %v578_v3  ;;  %33 = vst.msk [vmem:[#allocation2 + $0x8] sm:$0xff] %vm31_vm0, %v578_v3  ;;  %v64_v4 = vpack.c.bf16 %v57_v1, %v56_v0  ;;  %v59_v5 = vld [vmem:[%s807_s1 + $0x18] sm:$0xff]  ;;  %v60_v7 = vld [vmem:[%s807_s1 + $0x20] sm:$0xff] }
   0x3   :  { %35 = vst.msk [vmem:[#allocation2 + $0x18] sm:$0xff] %vm31_vm0, %v578_v3  ;;  %36 = vst.msk [vmem:[#allocation2 + $0x20] sm:$0xff] %vm31_vm0, %v578_v3  ;;  %v65_v6 = vpack.c.bf16 %v59_v5, %v58_v2  ;;  %v61_v8 = vld [vmem:[%s807_s1 + $0x28] sm:$0xff]  ;;  %v571_v9 = vld [vmem:[%s808_s0] sm:$0xff]  }
   0x4   :  { %37 = vst.msk [vmem:[#allocation2 + $0x28] sm:$0xff] %vm31_vm0, %v578_v3  ;;  %38 = vst.msk [vmem:[#allocation2 + $0x30] sm:$0xff] %vm31_vm0, %v578_v3  ;;  %511 = vmatprep.subr.bf16.mxu0 %v64_v4  ;;  %v66_v10 = vpack.c.bf16 %v61_v8, %v60_v7  ;;  %v62_v11 = vld [vmem:[%s807_s1 + $0x30] sm:$0xff]  ;;  %519 = vmatprep.mubr.msk.bf16.mxu0 %vm88_vm1, %v571_v9  ;;  %v63_v12 = vld [vmem:[%s807_s1 + $0x38] sm:$0xff] }
   0x5   :  { %39 = vst.msk [vmem:[#allocation2 + $0x38] sm:$0xff] %vm31_vm0, %v578_v3  ;;  %512 = vmatpush3.bf16.msra.mxu0 %v64_v4  ;;  %v659_v13 = vld [vmem:[%s809_s2] sm:$0xff]  ;;  %v664_v14 = vld [vmem:[%s809_s2 + $0x8] sm:$0xff]  ;;  %v669_v15 = vld [vmem:[%s809_s2 + $0x10] sm:$0xff]  ;;  %v67_v23 = vpack.c.bf16 %v63_v12, %v62_v11 }
   0x6   :  { %513 = vmatprep.subr.bf16.mxu0 %v65_v6  ;;  %v674_v16 = vld [vmem:[%s809_s2 + $0x18] sm:$0xff]  ;;  %v551_v17 = vpack.i.bf16 %v664_v14, %v659_v13  ;;  %v355_v18 = vpack.c.bf16 %v664_v14, %v659_v13  ;;  %v685_v20 = vld [vmem:[%s809_s2 + $0x20] sm:$0xff]  ;;  %v690_v21 = vld [vmem:[%s809_s2 + $0x28] sm:$0xff] }
   0x7   :  { %v356_v19 = vpack.c.bf16 %v674_v16, %v669_v15  ;;  %v695_v22 = vld [vmem:[%s809_s2 + $0x30] sm:$0xff]  ;;  %v561_v24 = vpack.i.bf16 %v690_v21, %v685_v20  ;;  %v357_v25 = vpack.c.bf16 %v690_v21, %v685_v20  ;;  %v704_v26 = vld [vmem:[%s809_s2 + $0x38] sm:$0xff]  ;;  %v556_v27 = vpack.i.bf16 %v674_v16, %v669_v15  ;;  %v572_v30 = vld [vmem:[%s808_s0 + $0x8] sm:$0xff]  }
   0x8   :  { %552 = vrot.lane.b32.xlu0 %v551_v17, %s579_s11  ;;  %v358_v28 = vpack.c.bf16 %v704_v26, %v695_v22  ;;  %v566_v29 = vpack.i.bf16 %v704_v26, %v695_v22  ;;  %v573_v31 = vld [vmem:[%s808_s0 + $0x10] sm:$0xff]   ;;  %v574_v32 = vld [vmem:[%s808_s0 + $0x18] sm:$0xff]   ;;  %v575_v33 = vld [vmem:[%s810_s3] sm:$0xff]  }
   0x9   :  { %514 = vmatpush3.bf16.msra.mxu0 %v65_v6  ;;  %562 = vrot.lane.b32.xlu1 %v561_v24, %s579_s11  ;;  %v576_v34 = vld [vmem:[%s810_s3 + $0x8] sm:$0xff]   ;;  %v577_v35 = vld [vmem:[%s811_s5] sm:$0xff]   ;;  %v42_v36 = vld [vmem:[#allocation2 + $0x10] sm:$0xff] }
   0xa   :  { %515 = vmatprep.subr.bf16.mxu0 %v66_v10  ;;  %527 = vmatprep.subr.bf16.mxu1 %v575_v33  ;;  %v40_v37 = vld [vmem:[#allocation2] sm:$0xff]  ;;  %v43_v39 = vld [vmem:[#allocation2 + $0x18] sm:$0xff]  ;;  %v41_v42 = vld [vmem:[#allocation2 + $0x8] sm:$0xff] }
   0xb   :  { %528 = vmatpush3.bf16.msra.mxu1 %v575_v33  ;;  %v46_v49 = vld [vmem:[#allocation2 + $0x30] sm:$0xff]  ;;  %v44_v50 = vld [vmem:[#allocation2 + $0x20] sm:$0xff]  ;;  %v45_v57 = vld [vmem:[#allocation2 + $0x28] sm:$0xff] }
   0xc   :  { %557 = vrot.lane.b32.xlu0 %v556_v27, %s579_s11  ;;  %529 = vmatprep.subr.bf16.mxu1 %v576_v34  ;;  %v47_v53 = vld [vmem:[#allocation2 + $0x38] sm:$0xff]  ;;  %v479_v15 = vld [vmem:[%s812_s4] ss:$0 sm:$0xff] }
   0xd   :  { %516 = vmatpush3.bf16.msra.mxu0 %v66_v10  ;;  %567 = vrot.lane.b32.xlu1 %v566_v29, %s579_s11  ;;  %v486_v22 = vld [vmem:[%s813_s6] ss:$0 sm:$0xff] }
   0xe   :  { %517 = vmatprep.subr.bf16.mxu0 %v67_v23 }
   0xf   :  { %530 = vmatpush3.bf16.msra.mxu1 %v576_v34 }
  0x10   :  { %539 = vmatprep.subr.bf16.mxu1 %v577_v35 }
  0x11   :  { %518 = vmatpush3.bf16.msra.mxu0 %v67_v23 }
  0x14   :  { %520 = vmatmul.mubr.msk.bf16.vlgmr.msra.gmra.mrb[0].mxu0 %vm88_vm1, %v572_v30 }
  0x15   :  { %523 = vmatprep.mubr.msk.bf16.mxu0 %vm88_vm1, %v573_v31 }
  0x1c   :  { %524 = vmatmul.mubr.msk.bf16.gmra.mrb[4].mxu0 %vm88_vm1, %v574_v32 }
  0x7a   :  { %v553_v45 = vpop.permute.xlu0 %552 }
  0x7b   :  { %v554_v58 = vunpack.i.l.bf16 %v553_v45  ;;  %v563_v61 = vpop.permute.xlu1 %562  ;;  %v555_v2 = vunpack.i.h.bf16 %v553_v45 }
  0x7c   :  { %v564_v24 = vunpack.i.l.bf16 %v563_v61  ;;  %v565_v30 = vunpack.i.h.bf16 %v563_v61 }
  0x7e   :  { %v558_v51 = vpop.permute.xlu0 %557 }
  0x7f   :  { %v560_v54 = vunpack.i.h.bf16 %v558_v51  ;;  %v559_v62 = vunpack.i.l.bf16 %v558_v51  ;;  %v568_v17 = vpop.permute.xlu1 %567 }
  0x80   :  { %v570_v23 = vunpack.i.h.bf16 %v568_v17  ;;  %v569_v29 = vunpack.i.l.bf16 %v568_v17 }
  0xe7   :  { %v521_v38 = vpop.f32.mrb[0].mxu0 }
  0xe8   :  { %v168_v40 = vadd.f32 %v521_v38, %v42_v36  ;;  %v135_v41 = vpop.f32.mrb[1].mxu0 }
  0xe9   :  { %v166_v43 = vadd.f32 %v135_v41, %v40_v37  ;;  %v522_v44 = vpop.f32.mrb[2].mxu0 }
  0xea   :  { %177 = vst.msk [vmem:[#allocation2 + $0x10] sm:$0xff] %vm31_vm0, %v168_v40  ;;  %v169_v46 = vadd.f32 %v522_v44, %v43_v39  ;;  %v138_v47 = vpop.f32.mrb[3].mxu0 }
  0xeb   :  { %175 = vst.msk [vmem:[#allocation2] sm:$0xff] %vm31_vm0, %v166_v43  ;;  %v167_v48 = vadd.f32 %v138_v47, %v41_v42 }
  0xec   :  { %178 = vst.msk [vmem:[#allocation2 + $0x18] sm:$0xff] %vm31_vm0, %v169_v46 }
  0xed   :  { %176 = vst.msk [vmem:[#allocation2 + $0x8] sm:$0xff] %vm31_vm0, %v167_v48 }
  0xef   :  { %v525_v52 = vpop.f32.mrb[4].mxu0 }
  0xf0   :  { %v172_v55 = vadd.f32 %v525_v52, %v46_v49  ;;  %v151_v56 = vpop.f32.mrb[5].mxu0 }
  0xf1   :  { %v170_v59 = vadd.f32 %v151_v56, %v44_v50  ;;  %v526_v60 = vpop.f32.mrb[6].mxu0  ;;  %v196_v3 = vld [vmem:[#allocation2 + $0x10] sm:$0xff] }
  0xf2   :  { %181 = vst.msk [vmem:[#allocation2 + $0x30] sm:$0xff] %vm31_vm0, %v172_v55  ;;  %v173_v63 = vadd.f32 %v526_v60, %v47_v53  ;;  %v154_v0 = vpop.f32.mrb[7].mxu0  ;;  %v194_v1 = vld [vmem:[#allocation2] sm:$0xff]  ;;  %v236_v10 = vsel %vm31_vm0, %v196_v3, %v559_v62 }
  0xf3   :  { %v197_v4 = vld [vmem:[#allocation2 + $0x18] sm:$0xff]  ;;  %179 = vst.msk [vmem:[#allocation2 + $0x20] sm:$0xff] %vm31_vm0, %v170_v59  ;;  %v171_v5 = vadd.f32 %v154_v0, %v45_v57  ;;  %v234_v8 = vsel %vm31_vm0, %v194_v1, %v554_v58 }
  0xf4   :  { %v237_v6 = vsel %vm31_vm0, %v197_v4, %v560_v54  ;;  %182 = vst.msk [vmem:[#allocation2 + $0x38] sm:$0xff] %vm31_vm0, %v173_v63  ;;  %v195_v7 = vld [vmem:[#allocation2 + $0x8] sm:$0xff] }
  0xf5   :  { %180 = vst.msk [vmem:[#allocation2 + $0x28] sm:$0xff] %vm31_vm0, %v171_v5  ;;  %v235_v9 = vsel %vm31_vm0, %v195_v7, %v555_v2  ;;  %v243_v12 = vpack.c.bf16 %v237_v6, %v236_v10 }
  0xf6   :  { %v242_v11 = vpack.c.bf16 %v235_v9, %v234_v8 }
  0xf8   :  { %531 = vmatprep.mubr.msk.bf16.mxu1 %vm269_vm2, %v242_v11 }
  0xf9   :  { %532 = vmatmul.mubr.msk.bf16.vlgmr.msra.gmra.mrb[0].mxu1 %vm269_vm2, %v243_v12  ;;  %v200_v31 = vld [vmem:[#allocation2 + $0x30] sm:$0xff] }
  0xfa   :  { %v198_v27 = vld [vmem:[#allocation2 + $0x20] sm:$0xff]  ;;  %540 = vmatpush3.bf16.msra.mxu1 %v577_v35  ;;  %v240_v39 = vsel %vm31_vm0, %v200_v31, %v569_v29 }
  0xfb   :  { %v201_v32 = vld [vmem:[#allocation2 + $0x38] sm:$0xff]  ;;  %v238_v36 = vsel %vm31_vm0, %v198_v27, %v564_v24 }
  0xfc   :  { %v199_v33 = vld [vmem:[#allocation2 + $0x28] sm:$0xff]  ;;  %v241_v34 = vsel %vm31_vm0, %v201_v32, %v570_v23 }
  0xfd   :  { %v239_v37 = vsel %vm31_vm0, %v199_v33, %v565_v30  ;;  %v245_v40 = vpack.c.bf16 %v241_v34, %v240_v39 }
  0xfe   :  { %v244_v38 = vpack.c.bf16 %v239_v37, %v238_v36 }
 0x100   :  { %535 = vmatprep.mubr.msk.bf16.mxu1 %vm269_vm2, %v244_v38 }
 0x101   :  { %536 = vmatmul.mubr.msk.bf16.gmra.mrb[4].mxu1 %vm269_vm2, %v245_v40 }
 0x102   :  { %541 = vmatprep.mubr.msk.bf16.mxu1 %vm31_vm0, %v355_v18 }
 0x109   :  { %542 = vmatmul.mubr.msk.bf16.vlgmr.msra.gmra.mrb[8].mxu1 %vm31_vm0, %v356_v19 }
 0x10a   :  { %545 = vmatprep.mubr.msk.bf16.mxu1 %vm31_vm0, %v357_v25 }
 0x111   :  { %546 = vmatmul.mubr.msk.bf16.gmra.mrb[12].mxu1 %vm31_vm0, %v358_v28 }
 0x1cc   :  { %v533_v35 = vpop.f32.mrb[0].mxu1 }
 0x1cd   :  { %v316_v41 = vpop.f32.mrb[1].mxu1  ;;  %v325_v20 = vadd.f32 %v533_v35, %v479_v15 }
 0x1ce   :  { %v534_v13 = vpop.f32.mrb[2].mxu1  ;;  %v317_v21 = vadd.f32 %v479_v15, %v316_v41 }
 0x1cf   :  { %v319_v14 = vpop.f32.mrb[3].mxu1  ;;  %v328_v25 = vadd.f32 %v534_v13, %v479_v15  ;;  %v349_v43 = vmax.f32 %v325_v20, 0.0 }
 0x1d0   :  { %v320_v26 = vadd.f32 %v479_v15, %v319_v14  ;;  %v347_v46 = vmax.f32 %v317_v21, 0.0 }
 0x1d1   :  { %v350_v49 = vmax.f32 %v328_v25, 0.0 }
 0x1d2   :  { %v348_v53 = vmax.f32 %v320_v26, 0.0 }
 0x1d4   :  { %v537_v18 = vpop.f32.mrb[4].mxu1 }
 0x1d5   :  { %v332_v42 = vpop.f32.mrb[5].mxu1  ;;  %v341_v56 = vadd.f32 %v537_v18, %v479_v15 }
 0x1d6   :  { %v538_v16 = vpop.f32.mrb[6].mxu1  ;;  %v333_v58 = vadd.f32 %v479_v15, %v332_v42 }
 0x1d7   :  { %v335_v19 = vpop.f32.mrb[7].mxu1  ;;  %v344_v60 = vadd.f32 %v538_v16, %v479_v15  ;;  %v353_v63 = vmax.f32 %v341_v56, 0.0 }
 0x1d8   :  { %v336_v61 = vadd.f32 %v479_v15, %v335_v19  ;;  %v351_v2 = vmax.f32 %v333_v58, 0.0 }
 0x1d9   :  { %v354_v5 = vmax.f32 %v344_v60, 0.0 }
 0x1da   :  { %v352_v9 = vmax.f32 %v336_v61, 0.0 }
 0x1dc   :  { %v543_v28 = vpop.f32.mrb[8].mxu1 }
 0x1dd   :  { %v429_v44 = vadd.f32 %v543_v28, %v486_v22  ;;  %v420_v45 = vpop.f32.mrb[9].mxu1 }
 0x1de   :  { %v421_v47 = vadd.f32 %v486_v22, %v420_v45  ;;  %v544_v48 = vpop.f32.mrb[10].mxu1 }
 0x1df   :  { %v453_v50 = vadd.f32 %v429_v44, %v349_v43  ;;  %v432_v51 = vadd.f32 %v544_v48, %v486_v22  ;;  %v423_v52 = vpop.f32.mrb[11].mxu1 }
 0x1e0   :  { %v451_v54 = vadd.f32 %v421_v47, %v347_v46  ;;  %v424_v55 = vadd.f32 %v486_v22, %v423_v52 }
 0x1e1   :  { %461 = vst.msk [vmem:[%s814_s7 + $0x10] sm:$0xff] %vm269_vm2, %v453_v50  ;;  %v454_v57 = vadd.f32 %v432_v51, %v350_v49 }
 0x1e2   :  { %459 = vst.msk [vmem:[%s814_s7] sm:$0xff] %vm269_vm2, %v451_v54  ;;  %v452_v59 = vadd.f32 %v424_v55, %v348_v53 }
 0x1e3   :  { %462 = vst.msk [vmem:[%s814_s7 + $0x18] sm:$0xff] %vm269_vm2, %v454_v57 }
 0x1e4   :  { %460 = vst.msk [vmem:[%s814_s7 + $0x8] sm:$0xff] %vm269_vm2, %v452_v59  ;;  %v547_v62 = vpop.f32.mrb[12].mxu1 }
 0x1e5   :  { %v445_v0 = vadd.f32 %v547_v62, %v486_v22  ;;  %v436_v1 = vpop.f32.mrb[13].mxu1 }
 0x1e6   :  { %v437_v3 = vadd.f32 %v486_v22, %v436_v1  ;;  %v548_v4 = vpop.f32.mrb[14].mxu1 }
 0x1e7   :  { %v457_v6 = vadd.f32 %v445_v0, %v353_v63  ;;  %v448_v7 = vadd.f32 %v548_v4, %v486_v22  ;;  %v439_v8 = vpop.f32.mrb[15].mxu1 }
 0x1e8   :  { %v455_v10 = vadd.f32 %v437_v3, %v351_v2  ;;  %v440_v11 = vadd.f32 %v486_v22, %v439_v8 }
 0x1e9   :  { %465 = vst.msk [vmem:[%s814_s7 + $0x30] sm:$0xff] %vm269_vm2, %v457_v6  ;;  %v458_v12 = vadd.f32 %v448_v7, %v354_v5 }
 0x1ea   :  { %463 = vst.msk [vmem:[%s814_s7 + $0x20] sm:$0xff] %vm269_vm2, %v455_v10  ;;  %v456_v17 = vadd.f32 %v440_v11, %v352_v9 }
 0x1eb   :  { %466 = vst.msk [vmem:[%s814_s7 + $0x38] sm:$0xff] %vm269_vm2, %v458_v12 }
 0x1ec   :  { %464 = vst.msk [vmem:[%s814_s7 + $0x28] sm:$0xff] %vm269_vm2, %v456_v17 }

// kernel: edge_predictor_res_gcn.4
= control target key start
LH: loop header
LB: loop body
LE: loop exit
PB: predicated region body
PF: predicated region fallthrough
CT: control target
= control target key end

     0   :  { %vm25_vm0 = vcmask 261120   ;;  %v479_v3 = vmov 0.0   ;;  %vm82_vm1 = vcmask 523264   ;;  %s480_s26 = smov 32   ;;  %s682_s1 = inlined_call_operand.vmem [shape: f32[64,32], index: 1, kind: input, shape index: {}, may-alias: {1,2}]   ;;  %s683_s0 = inlined_call_operand.vmem [shape: bf16[64,64], index: 0, kind: input, shape index: {}]   ;;  %s684_s2 = inlined_call_operand.vmem [shape: f32[64,32], index: 2, kind: input, shape index: {}, may-alias: {1,2}]   ;;  %s685_s3 = inlined_call_operand.vmem [shape: bf16[64,32], index: 3, kind: input, shape index: {}]   ;;  %s686_s4 = inlined_call_operand.vmem [shape: f32[1,32], index: 4, kind: input, shape index: {}]   ;;  %s687_s5 = inlined_call_operand.vmem [shape: f32[64,32], index: 5, kind: output, shape index: {}]  }
   0x1   :  { %v50_v0 = vld [vmem:[%s682_s1] sm:$0xff]  ;;  %v51_v1 = vld [vmem:[%s682_s1 + $0x8] sm:$0xff]  ;;  %v52_v2 = vld [vmem:[%s682_s1 + $0x10] sm:$0xff]  ;;  %28 = vst.msk [vmem:[#allocation2 + $0x10] sm:$0xff] %vm25_vm0, %v479_v3 }
   0x2   :  { %26 = vst.msk [vmem:[#allocation2] sm:$0xff] %vm25_vm0, %v479_v3  ;;  %27 = vst.msk [vmem:[#allocation2 + $0x8] sm:$0xff] %vm25_vm0, %v479_v3  ;;  %v58_v4 = vpack.c.bf16 %v51_v1, %v50_v0  ;;  %v53_v5 = vld [vmem:[%s682_s1 + $0x18] sm:$0xff]  ;;  %v54_v7 = vld [vmem:[%s682_s1 + $0x20] sm:$0xff] }
   0x3   :  { %29 = vst.msk [vmem:[#allocation2 + $0x18] sm:$0xff] %vm25_vm0, %v479_v3  ;;  %30 = vst.msk [vmem:[#allocation2 + $0x20] sm:$0xff] %vm25_vm0, %v479_v3  ;;  %v59_v6 = vpack.c.bf16 %v53_v5, %v52_v2  ;;  %v55_v8 = vld [vmem:[%s682_s1 + $0x28] sm:$0xff]  ;;  %v471_v9 = vld [vmem:[%s683_s0] sm:$0xff]  }
   0x4   :  { %31 = vst.msk [vmem:[#allocation2 + $0x28] sm:$0xff] %vm25_vm0, %v479_v3  ;;  %32 = vst.msk [vmem:[#allocation2 + $0x30] sm:$0xff] %vm25_vm0, %v479_v3  ;;  %417 = vmatprep.subr.bf16.mxu0 %v58_v4  ;;  %v60_v10 = vpack.c.bf16 %v55_v8, %v54_v7  ;;  %v56_v11 = vld [vmem:[%s682_s1 + $0x30] sm:$0xff]  ;;  %425 = vmatprep.mubr.msk.bf16.mxu0 %vm82_vm1, %v471_v9  ;;  %v57_v12 = vld [vmem:[%s682_s1 + $0x38] sm:$0xff] }
   0x5   :  { %33 = vst.msk [vmem:[#allocation2 + $0x38] sm:$0xff] %vm25_vm0, %v479_v3  ;;  %418 = vmatpush3.bf16.msra.mxu0 %v58_v4  ;;  %v550_v13 = vld [vmem:[%s684_s2] sm:$0xff]  ;;  %v555_v14 = vld [vmem:[%s684_s2 + $0x8] sm:$0xff]  ;;  %v560_v15 = vld [vmem:[%s684_s2 + $0x10] sm:$0xff]  ;;  %v61_v21 = vpack.c.bf16 %v57_v12, %v56_v11 }
   0x6   :  { %419 = vmatprep.subr.bf16.mxu0 %v59_v6  ;;  %v565_v16 = vld [vmem:[%s684_s2 + $0x18] sm:$0xff]  ;;  %v451_v17 = vpack.i.bf16 %v555_v14, %v550_v13  ;;  %v572_v18 = vld [vmem:[%s684_s2 + $0x20] sm:$0xff]  ;;  %v577_v19 = vld [vmem:[%s684_s2 + $0x28] sm:$0xff] }
   0x7   :  { %v582_v20 = vld [vmem:[%s684_s2 + $0x30] sm:$0xff]  ;;  %v461_v22 = vpack.i.bf16 %v577_v19, %v572_v18  ;;  %v589_v23 = vld [vmem:[%s684_s2 + $0x38] sm:$0xff]  ;;  %v456_v24 = vpack.i.bf16 %v565_v16, %v560_v15  ;;  %v472_v26 = vld [vmem:[%s683_s0 + $0x8] sm:$0xff]  }
   0x8   :  { %452 = vrot.lane.b32.xlu0 %v451_v17, %s480_s26  ;;  %v466_v25 = vpack.i.bf16 %v589_v23, %v582_v20  ;;  %v473_v27 = vld [vmem:[%s683_s0 + $0x10] sm:$0xff]   ;;  %v474_v28 = vld [vmem:[%s683_s0 + $0x18] sm:$0xff]   ;;  %v475_v29 = vld [vmem:[%s685_s3] sm:$0xff]  }
   0x9   :  { %420 = vmatpush3.bf16.msra.mxu0 %v59_v6  ;;  %462 = vrot.lane.b32.xlu1 %v461_v22, %s480_s26  ;;  %v476_v30 = vld [vmem:[%s685_s3 + $0x8] sm:$0xff]   ;;  %v477_v31 = vld [vmem:[%s685_s3 + $0x10] sm:$0xff]   ;;  %v478_v32 = vld [vmem:[%s685_s3 + $0x18] sm:$0xff]  }
   0xa   :  { %421 = vmatprep.subr.bf16.mxu0 %v60_v10  ;;  %433 = vmatprep.subr.bf16.mxu1 %v475_v29  ;;  %v36_v33 = vld [vmem:[#allocation2 + $0x10] sm:$0xff]  ;;  %v34_v34 = vld [vmem:[#allocation2] sm:$0xff]  ;;  %v37_v36 = vld [vmem:[#allocation2 + $0x18] sm:$0xff] }
   0xb   :  { %434 = vmatpush3.bf16.msra.mxu1 %v475_v29  ;;  %v35_v39 = vld [vmem:[#allocation2 + $0x8] sm:$0xff]  ;;  %v40_v46 = vld [vmem:[#allocation2 + $0x30] sm:$0xff]  ;;  %v38_v47 = vld [vmem:[#allocation2 + $0x20] sm:$0xff] }
   0xc   :  { %457 = vrot.lane.b32.xlu0 %v456_v24, %s480_s26  ;;  %435 = vmatprep.subr.bf16.mxu1 %v476_v30  ;;  %v41_v50 = vld [vmem:[#allocation2 + $0x38] sm:$0xff]  ;;  %v39_v54 = vld [vmem:[#allocation2 + $0x28] sm:$0xff] }
   0xd   :  { %422 = vmatpush3.bf16.msra.mxu0 %v60_v10  ;;  %467 = vrot.lane.b32.xlu1 %v466_v25, %s480_s26 }
   0xe   :  { %423 = vmatprep.subr.bf16.mxu0 %v61_v21 }
   0xf   :  { %436 = vmatpush3.bf16.msra.mxu1 %v476_v30 }
  0x10   :  { %437 = vmatprep.subr.bf16.mxu1 %v477_v31 }
  0x11   :  { %424 = vmatpush3.bf16.msra.mxu0 %v61_v21 }
  0x13   :  { %438 = vmatpush3.bf16.msra.mxu1 %v477_v31 }
  0x14   :  { %426 = vmatmul.mubr.msk.bf16.vlgmr.msra.gmra.mrb[0].mxu0 %vm82_vm1, %v472_v26  ;;  %439 = vmatprep.subr.bf16.mxu1 %v478_v32 }
  0x15   :  { %429 = vmatprep.mubr.msk.bf16.mxu0 %vm82_vm1, %v473_v27 }
  0x17   :  { %440 = vmatpush3.bf16.msra.mxu1 %v478_v32 }
  0x1c   :  { %430 = vmatmul.mubr.msk.bf16.gmra.mrb[4].mxu0 %vm82_vm1, %v474_v28 }
  0x7a   :  { %v453_v42 = vpop.permute.xlu0 %452 }
  0x7b   :  { %v454_v55 = vunpack.i.l.bf16 %v453_v42  ;;  %v463_v58 = vpop.permute.xlu1 %462  ;;  %v455_v63 = vunpack.i.h.bf16 %v453_v42 }
  0x7c   :  { %v464_v12 = vunpack.i.l.bf16 %v463_v58  ;;  %v465_v22 = vunpack.i.h.bf16 %v463_v58 }
  0x7e   :  { %v458_v48 = vpop.permute.xlu0 %457 }
  0x7f   :  { %v460_v51 = vunpack.i.h.bf16 %v458_v48  ;;  %v459_v59 = vunpack.i.l.bf16 %v458_v48  ;;  %v468_v10 = vpop.permute.xlu1 %467 }
  0x80   :  { %v470_v11 = vunpack.i.h.bf16 %v468_v10  ;;  %v469_v21 = vunpack.i.l.bf16 %v468_v10 }
  0xe7   :  { %v427_v35 = vpop.f32.mrb[0].mxu0 }
  0xe8   :  { %v162_v37 = vadd.f32 %v427_v35, %v36_v33  ;;  %v129_v38 = vpop.f32.mrb[1].mxu0  ;;  %v392_v33 = vld [vmem:[%s686_s4] ss:$0 sm:$0xff] }
  0xe9   :  { %v160_v40 = vadd.f32 %v129_v38, %v34_v34  ;;  %v428_v41 = vpop.f32.mrb[2].mxu0 }
  0xea   :  { %171 = vst.msk [vmem:[#allocation2 + $0x10] sm:$0xff] %vm25_vm0, %v162_v37  ;;  %v163_v43 = vadd.f32 %v428_v41, %v37_v36  ;;  %v132_v44 = vpop.f32.mrb[3].mxu0 }
  0xeb   :  { %169 = vst.msk [vmem:[#allocation2] sm:$0xff] %vm25_vm0, %v160_v40  ;;  %v161_v45 = vadd.f32 %v132_v44, %v35_v39 }
  0xec   :  { %172 = vst.msk [vmem:[#allocation2 + $0x18] sm:$0xff] %vm25_vm0, %v163_v43 }
  0xed   :  { %170 = vst.msk [vmem:[#allocation2 + $0x8] sm:$0xff] %vm25_vm0, %v161_v45 }
  0xef   :  { %v431_v49 = vpop.f32.mrb[4].mxu0 }
  0xf0   :  { %v166_v52 = vadd.f32 %v431_v49, %v40_v46  ;;  %v145_v53 = vpop.f32.mrb[5].mxu0 }
  0xf1   :  { %v164_v56 = vadd.f32 %v145_v53, %v38_v47  ;;  %v432_v57 = vpop.f32.mrb[6].mxu0  ;;  %v190_v0 = vld [vmem:[#allocation2 + $0x10] sm:$0xff] }
  0xf2   :  { %175 = vst.msk [vmem:[#allocation2 + $0x30] sm:$0xff] %vm25_vm0, %v166_v52  ;;  %v167_v60 = vadd.f32 %v432_v57, %v41_v50  ;;  %v148_v61 = vpop.f32.mrb[7].mxu0  ;;  %v188_v62 = vld [vmem:[#allocation2] sm:$0xff]  ;;  %v230_v7 = vsel %vm25_vm0, %v190_v0, %v459_v59 }
  0xf3   :  { %v191_v1 = vld [vmem:[#allocation2 + $0x18] sm:$0xff]  ;;  %173 = vst.msk [vmem:[#allocation2 + $0x20] sm:$0xff] %vm25_vm0, %v164_v56  ;;  %v165_v2 = vadd.f32 %v148_v61, %v39_v54  ;;  %v228_v5 = vsel %vm25_vm0, %v188_v62, %v454_v55 }
  0xf4   :  { %v231_v3 = vsel %vm25_vm0, %v191_v1, %v460_v51  ;;  %176 = vst.msk [vmem:[#allocation2 + $0x38] sm:$0xff] %vm25_vm0, %v167_v60  ;;  %v189_v4 = vld [vmem:[#allocation2 + $0x8] sm:$0xff] }
  0xf5   :  { %174 = vst.msk [vmem:[#allocation2 + $0x28] sm:$0xff] %vm25_vm0, %v165_v2  ;;  %v229_v6 = vsel %vm25_vm0, %v189_v4, %v455_v63  ;;  %v237_v9 = vpack.c.bf16 %v231_v3, %v230_v7 }
  0xf6   :  { %v236_v8 = vpack.c.bf16 %v229_v6, %v228_v5 }
  0xf8   :  { %441 = vmatprep.mubr.msk.bf16.mxu1 %vm82_vm1, %v236_v8 }
  0xf9   :  { %442 = vmatmul.mubr.msk.bf16.vlgmr.msra.gmra.mrb[0].mxu1 %vm82_vm1, %v237_v9  ;;  %v194_v24 = vld [vmem:[#allocation2 + $0x30] sm:$0xff] }
  0xfa   :  { %v192_v17 = vld [vmem:[#allocation2 + $0x20] sm:$0xff]  ;;  %v234_v31 = vsel %vm25_vm0, %v194_v24, %v469_v21 }
  0xfb   :  { %v195_v25 = vld [vmem:[#allocation2 + $0x38] sm:$0xff]  ;;  %v232_v28 = vsel %vm25_vm0, %v192_v17, %v464_v12 }
  0xfc   :  { %v193_v26 = vld [vmem:[#allocation2 + $0x28] sm:$0xff]  ;;  %v235_v27 = vsel %vm25_vm0, %v195_v25, %v470_v11 }
  0xfd   :  { %v233_v29 = vsel %vm25_vm0, %v193_v26, %v465_v22  ;;  %v239_v32 = vpack.c.bf16 %v235_v27, %v234_v31 }
  0xfe   :  { %v238_v30 = vpack.c.bf16 %v233_v29, %v232_v28 }
 0x100   :  { %445 = vmatprep.mubr.msk.bf16.mxu1 %vm82_vm1, %v238_v30 }
 0x101   :  { %446 = vmatmul.mubr.msk.bf16.gmra.mrb[4].mxu1 %vm82_vm1, %v239_v32 }
 0x1cc   :  { %v443_v34 = vpop.f32.mrb[0].mxu1 }
 0x1cd   :  { %v334_v35 = vadd.f32 %v443_v34, %v392_v33  ;;  %v325_v36 = vpop.f32.mrb[1].mxu1 }
 0x1ce   :  { %v326_v37 = vadd.f32 %v392_v33, %v325_v36  ;;  %v444_v38 = vpop.f32.mrb[2].mxu1 }
 0x1cf   :  { %v358_v39 = vmax.f32 %v334_v35, 0.0  ;;  %v337_v40 = vadd.f32 %v444_v38, %v392_v33  ;;  %v328_v41 = vpop.f32.mrb[3].mxu1 }
 0x1d0   :  { %v356_v42 = vmax.f32 %v326_v37, 0.0  ;;  %v329_v43 = vadd.f32 %v392_v33, %v328_v41 }
 0x1d1   :  { %v366_v44 = vadd.f32 %v358_v39, %v560_v15  ;;  %v359_v45 = vmax.f32 %v337_v40, 0.0 }
 0x1d2   :  { %v364_v46 = vadd.f32 %v356_v42, %v550_v13  ;;  %v357_v47 = vmax.f32 %v329_v43, 0.0 }
 0x1d3   :  { %374 = vst.msk [vmem:[%s687_s5 + $0x10] sm:$0xff] %vm25_vm0, %v366_v44  ;;  %v367_v48 = vadd.f32 %v359_v45, %v565_v16 }
 0x1d4   :  { %372 = vst.msk [vmem:[%s687_s5] sm:$0xff] %vm25_vm0, %v364_v46  ;;  %v365_v49 = vadd.f32 %v357_v47, %v555_v14  ;;  %v447_v50 = vpop.f32.mrb[4].mxu1 }
 0x1d5   :  { %375 = vst.msk [vmem:[%s687_s5 + $0x18] sm:$0xff] %vm25_vm0, %v367_v48  ;;  %v350_v13 = vadd.f32 %v447_v50, %v392_v33  ;;  %v341_v15 = vpop.f32.mrb[5].mxu1 }
 0x1d6   :  { %373 = vst.msk [vmem:[%s687_s5 + $0x8] sm:$0xff] %vm25_vm0, %v365_v49  ;;  %v342_v16 = vadd.f32 %v392_v33, %v341_v15  ;;  %v448_v51 = vpop.f32.mrb[6].mxu1 }
 0x1d7   :  { %v362_v52 = vmax.f32 %v350_v13, 0.0  ;;  %v353_v53 = vadd.f32 %v448_v51, %v392_v33  ;;  %v344_v54 = vpop.f32.mrb[7].mxu1 }
 0x1d8   :  { %v360_v55 = vmax.f32 %v342_v16, 0.0  ;;  %v345_v14 = vadd.f32 %v392_v33, %v344_v54 }
 0x1d9   :  { %v370_v56 = vadd.f32 %v362_v52, %v582_v20  ;;  %v363_v57 = vmax.f32 %v353_v53, 0.0 }
 0x1da   :  { %v368_v58 = vadd.f32 %v360_v55, %v572_v18  ;;  %v361_v59 = vmax.f32 %v345_v14, 0.0 }
 0x1db   :  { %378 = vst.msk [vmem:[%s687_s5 + $0x30] sm:$0xff] %vm25_vm0, %v370_v56  ;;  %v371_v60 = vadd.f32 %v363_v57, %v589_v23 }
 0x1dc   :  { %376 = vst.msk [vmem:[%s687_s5 + $0x20] sm:$0xff] %vm25_vm0, %v368_v58  ;;  %v369_v61 = vadd.f32 %v361_v59, %v577_v19 }
 0x1dd   :  { %379 = vst.msk [vmem:[%s687_s5 + $0x38] sm:$0xff] %vm25_vm0, %v371_v60 }
 0x1de   :  { %377 = vst.msk [vmem:[%s687_s5 + $0x28] sm:$0xff] %vm25_vm0, %v369_v61 }

// kernel: edge_predictor_res_gcn.5
= control target key start
LH: loop header
LB: loop body
LE: loop exit
PB: predicated region body
PF: predicated region fallthrough
CT: control target
= control target key end

     0   :  { %s970_s0 = inlined_call_operand.vmem [shape: s32[128], index: 0, kind: input, shape index: {}]   ;;  %s971_s2 = inlined_call_operand.vmem [shape: f32[64,32], index: 2, kind: input, shape index: {}]   ;;  %s972_s3 = inlined_call_operand.vmem [shape: bf16[64,32], index: 3, kind: input, shape index: {}]   ;;  %s973_s4 = inlined_call_operand.vmem [shape: f32[1,32], index: 4, kind: input, shape index: {}]   ;;  %s974_s5 = inlined_call_operand.vmem [shape: bf16[32,32], index: 5, kind: input, shape index: {}]   ;;  %s975_s6 = inlined_call_operand.vmem [shape: f32[1,32], index: 6, kind: input, shape index: {}]   ;;  %s976_s7 = inlined_call_operand.vmem [shape: bf16[32,128], index: 7, kind: input, shape index: {}]   ;;  %s977_s8 = inlined_call_operand.vmem [shape: f32[1,128], index: 8, kind: input, shape index: {}]   ;;  %s978_s9 = inlined_call_operand.vmem [shape: f32[128,128], index: 9, kind: output, shape index: {}]   ;;  %s979_s1 = inlined_call_operand.vmem [shape: s32[128], index: 1, kind: input, shape index: {}]  }
   0x1   :  { %s14_s11 = sshll.u32 %s970_s0, 4  ;;  %s18_s14 = sshll.u32 %s979_s1, 4  ;;  %s15_s11 = int_to_ptr.vmem [resolvable:$true] %s14_s11  ;;  %s19_s14 = int_to_ptr.vmem [resolvable:$true] %s18_s14 }
   0x2   :  { %s766_s15 = scalar_lea.vmem %s15_s11, 16  ;;  %p771_p1 = scmp.lt.s32.totalorder %s15_s11, %s15_s11 }
   0x3   :  { %p767_p0 = scmp.ne.s32.totalorder %s15_s11, %s766_s15  ;;  %p772_p2 = scmp.lt.s32.totalorder %s766_s15, %s766_s15 }
   0x5   :  { %p773_p3 = por %p772_p2, %p771_p1 }
   0x7   :  { %p774_p4 = pnand %p773_p3, %p767_p0 }
   0x9   :  { %777 = shalt.err (!%p774_p4)  }
   0xa   :  { %s800_s16 = smov [#allocation4]   ;;  %s778_s17 = scalar_lea.vmem %s19_s14, 16 }
   0xb   :  { %17 = dma.vmem_to_smem %s15_s11, 16, %s800_s16, [#allocation3] }
   0xc   :  { %p779_p5 = scmp.ne.s32.totalorder %s19_s14, %s778_s17  ;;  %p783_p6 = scmp.lt.s32.totalorder %s19_s14, %s19_s14 }
   0xd   :  { %p784_p7 = scmp.lt.s32.totalorder %s778_s17, %s778_s17 }
   0xf   :  { %p785_p8 = por %p784_p7, %p783_p6 }
  0x11   :  { %p786_p9 = pnand %p785_p8, %p779_p5 }
  0x13   :  { %789 = shalt.err (!%p786_p9)  }
  0x14   :  { %s801_s0 = smov [#allocation5]  }
  0x15   :  { %21 = dma.vmem_to_smem %s19_s14, 16, %s801_s0, [#allocation3] }
  0x16   :  { %794 = dma.done.wait [#allocation3], 32 }
  0x17   :  { %795 = vsyncadd [#allocation3], 4294967264 }
  0x18   :  { %23 = sfence }
  0x19   :  { %s796_s1 = smov 0  }
  0x1a LB: > { %s47_s18 = sld [smem:[#allocation4 + %s798_s1]]  ;;  %vm52_vm0 = vcmask 253952   ;;  %s802_s26 = smov 32   ;;  %vm60_vm1 = vcmask 516352   ;;  %s798_s1 = sphi %s796_s1, %s45_s1  }
  0x1b   : > { %s48_s19 = sld [smem:[#allocation5 + %s798_s1]]  ;;  %s51_s27 = scalar_lea.vmem [#allocation2], %s798_s1 }
  0x1c   : > { %s45_s1 = sadd.s32 1, %s798_s1  }
  0x1d   : > { %p42_p10 = scmp.ge.s32.totalorder %s45_s1, 128  }
  0x1e   :  { %v758_v3 = vld [vmem:[%s972_s3] sm:$0xff] (%p42_p10)   ;;  %v759_v4 = vld [vmem:[%s972_s3 + $0x8] sm:$0xff] (%p42_p10)   ;;  %v760_v5 = vld [vmem:[%s972_s3 + $0x10] sm:$0xff] (%p42_p10)   ;;  %vm125_vm2 = vcmask (%p42_p10), 523264   ;;  %vm294_vm3 = vcmask (%p42_p10), 261120  }
  0x1f   :  { %679 = vmatprep.subr.bf16.mxu0 (%p42_p10), %v758_v3  ;;  %v761_v9 = vld [vmem:[%s972_s3 + $0x18] sm:$0xff] (%p42_p10)   ;;  %v762_v13 = vld [vmem:[%s974_s5] sm:$0xff] (%p42_p10)   ;;  %v763_v15 = vld [vmem:[%s974_s5 + $0x8] sm:$0xff] (%p42_p10)  }
  0x20   : > { %s49_s22 = scalar_lea.vmem %s971_s2, %s47_s18  ;;  %680 = vmatpush3.bf16.msra.mxu0 (%p42_p10), %v758_v3  ;;  %743 = vmatprep.subr.bf16.mxu1 (%p42_p10), %v762_v13  ;;  %v764_v33 = vld [vmem:[%s976_s7] sm:$0xff] (%p42_p10)  }
  0x21   : > { %s54_s25 = scalar_lea.vmem %s971_s2, %s48_s19  ;;  %v50_v0 = vld [vmem:[%s49_s22] sm:$0x1]  ;;  %681 = vmatprep.subr.bf16.mxu0 (%p42_p10), %v759_v4  ;;  %745 = vmatpush3.bf16.msra.mxu1 (%p42_p10), %v762_v13 }
  0x22   : > { %v55_v1 = vld [vmem:[%s54_s25] sm:$0x1]  ;;  %53 = vst.msk [vmem:[%s51_s27] sm:$0x1] %vm52_vm0, %v50_v0  ;;  %744 = vmatprep.subr.bf16.mxu1 (%p42_p10), %v763_v15 }
  0x23   : > { %57 = vrot.lane.b32.xlu0 %v55_v1, %s802_s26  ;;  %v612_v34 = vld [vmem:[%s973_s4] ss:$0 sm:$0xff] (%p42_p10) }
  0x24   :  { %682 = vmatpush3.bf16.msra.mxu0 (%p42_p10), %v759_v4 }
  0x25   :  { %683 = vmatprep.subr.bf16.mxu0 (%p42_p10), %v760_v5  ;;  %746 = vmatpush3.bf16.msra.mxu1 (%p42_p10), %v763_v15 }
  0x26   :  { %723 = vmatprep.subr.bf16.mxu1 (%p42_p10), %v764_v33 }
  0x28   :  { %684 = vmatpush3.bf16.msra.mxu0 (%p42_p10), %v760_v5 }
  0x29   :  { %685 = vmatprep.subr.bf16.mxu0 (%p42_p10), %v761_v9 }
  0x2c   :  { %686 = vmatpush3.bf16.msra.mxu0 (%p42_p10), %v761_v9 }
  0x2d   :  { %703 = vmatprep.subr.bf16.mxu0 (%p42_p10), %v762_v13 }
  0x90   :  { %44 = sbr.rel (!%p42_p10) target bundleno = 26 (0x1a), region = 58 }
  0x95   : > { %v58_v2 = vpop.permute.xlu0 %57 }
  0x96   : > { %61 = vst.msk [vmem:[%s51_s27] sm:$0x1] %vm60_vm1, %v58_v2  ;;  %v765_v2 = vld [vmem:[%s976_s7 + $0x8] sm:$0xff] (%p42_p10)  }
  0x9d   :  { %v62_v6 = vld [vmem:[#allocation2] sm:$0xff]  ;;  %v63_v7 = vld [vmem:[#allocation2 + $0x8] sm:$0xff]  ;;  %v64_v10 = vld [vmem:[#allocation2 + $0x10] sm:$0xff] }
  0x9e   :  { %v78_v8 = vpack.c.bf16 %v63_v7, %v62_v6  ;;  %v65_v11 = vld [vmem:[#allocation2 + $0x18] sm:$0xff]  ;;  %v66_v12 = vld [vmem:[#allocation2 + $0x20] sm:$0xff]  ;;  %v67_v14 = vld [vmem:[#allocation2 + $0x28] sm:$0xff] }
  0x9f   :  { %v79_v16 = vpack.c.bf16 %v65_v11, %v64_v10  ;;  %v80_v17 = vpack.c.bf16 %v67_v14, %v66_v12  ;;  %v68_v18 = vld [vmem:[#allocation2 + $0x30] sm:$0xff]  ;;  %v69_v19 = vld [vmem:[#allocation2 + $0x38] sm:$0xff]  ;;  %v70_v20 = vld [vmem:[#allocation2 + $0x40] sm:$0xff] }
  0xa0   :  { %687 = vmatprep.mubr.msk.bf16.mxu0 %vm125_vm2, %v78_v8  ;;  %v71_v21 = vld [vmem:[#allocation2 + $0x48] sm:$0xff]  ;;  %v81_v22 = vpack.c.bf16 %v69_v19, %v68_v18  ;;  %v72_v24 = vld [vmem:[#allocation2 + $0x50] sm:$0xff]  ;;  %v73_v25 = vld [vmem:[#allocation2 + $0x58] sm:$0xff] }
  0xa1   :  { %688 = vmatmul.mubr.msk.bf16.vlgmr.msra.gmra.mrb[0].mxu0 %vm125_vm2, %v79_v16  ;;  %v82_v23 = vpack.c.bf16 %v71_v21, %v70_v20  ;;  %v74_v26 = vld [vmem:[#allocation2 + $0x60] sm:$0xff]  ;;  %v75_v27 = vld [vmem:[#allocation2 + $0x68] sm:$0xff]  ;;  %v83_v28 = vpack.c.bf16 %v73_v25, %v72_v24  ;;  %v76_v30 = vld [vmem:[#allocation2 + $0x70] sm:$0xff] }
  0xa2   :  { %691 = vmatprep.mubr.msk.bf16.mxu0 %vm125_vm2, %v80_v17  ;;  %704 = vmatpush3.bf16.msra.mxu0 %v762_v13  ;;  %v84_v29 = vpack.c.bf16 %v75_v27, %v74_v26  ;;  %v77_v31 = vld [vmem:[#allocation2 + $0x78] sm:$0xff] }
  0xa3   :  { %705 = vmatprep.subr.bf16.mxu0 %v763_v15  ;;  %v85_v32 = vpack.c.bf16 %v77_v31, %v76_v30 }
  0xa6   :  { %706 = vmatpush3.bf16.msra.mxu0 %v763_v15 }
  0xa9   :  { %692 = vmatmul.mubr.msk.bf16.gmra.mrb[4].mxu0 %vm125_vm2, %v81_v22 }
  0xaa   :  { %695 = vmatprep.mubr.msk.bf16.mxu0 %vm125_vm2, %v82_v23 }
  0xb1   :  { %696 = vmatmul.mubr.msk.bf16.gmra.mrb[8].mxu0 %vm125_vm2, %v83_v28  ;;  %v625_v28 = vld [vmem:[%s975_s6] ss:$0 sm:$0xff] }
  0xb2   :  { %699 = vmatprep.mubr.msk.bf16.mxu0 %vm125_vm2, %v84_v29 }
  0xb9   :  { %700 = vmatmul.mubr.msk.bf16.gmra.mrb[12].mxu0 %vm125_vm2, %v85_v32 }
 0x174   :  { %v689_v35 = vpop.f32.mrb[0].mxu0 }
 0x175   :  { %v193_v36 = vadd.f32 %v689_v35, %v612_v34  ;;  %v184_v37 = vpop.f32.mrb[1].mxu0 }
 0x176   :  { %v185_v38 = vadd.f32 %v612_v34, %v184_v37  ;;  %v690_v39 = vpop.f32.mrb[2].mxu0 }
 0x177   :  { %v196_v40 = vadd.f32 %v690_v39, %v612_v34  ;;  %v187_v41 = vpop.f32.mrb[3].mxu0  ;;  %v249_v43 = vmax.f32 %v193_v36, 0.0 }
 0x178   :  { %v188_v42 = vadd.f32 %v612_v34, %v187_v41  ;;  %v247_v45 = vmax.f32 %v185_v38, 0.0 }
 0x179   :  { %v250_v44 = vmax.f32 %v196_v40, 0.0 }
 0x17a   :  { %v248_v46 = vmax.f32 %v188_v42, 0.0 }
 0x17b   :  { %v264_v47 = vpack.c.bf16 %v250_v44, %v249_v43 }
 0x17c   :  { %v263_v48 = vpack.c.bf16 %v248_v46, %v247_v45  ;;  %v693_v49 = vpop.f32.mrb[4].mxu0 }
 0x17d   :  { %v209_v50 = vadd.f32 %v693_v49, %v612_v34  ;;  %v200_v51 = vpop.f32.mrb[5].mxu0 }
 0x17e   :  { %v201_v52 = vadd.f32 %v612_v34, %v200_v51  ;;  %v694_v53 = vpop.f32.mrb[6].mxu0  ;;  %707 = vmatprep.mubr.msk.bf16.mxu0 %vm294_vm3, %v263_v48 }
 0x17f   :  { %v212_v54 = vadd.f32 %v694_v53, %v612_v34  ;;  %v203_v55 = vpop.f32.mrb[7].mxu0  ;;  %708 = vmatmul.mubr.msk.bf16.vlgmr.msra.gmra.mrb[16].mxu0 %vm294_vm3, %v264_v47  ;;  %v253_v57 = vmax.f32 %v209_v50, 0.0 }
 0x180   :  { %v204_v56 = vadd.f32 %v612_v34, %v203_v55  ;;  %v251_v59 = vmax.f32 %v201_v52, 0.0 }
 0x181   :  { %v254_v58 = vmax.f32 %v212_v54, 0.0 }
 0x182   :  { %v252_v60 = vmax.f32 %v204_v56, 0.0 }
 0x183   :  { %v266_v61 = vpack.c.bf16 %v254_v58, %v253_v57 }
 0x184   :  { %v697_v62 = vpop.f32.mrb[8].mxu0  ;;  %v265_v63 = vpack.c.bf16 %v252_v60, %v251_v59 }
 0x185   :  { %v225_v0 = vadd.f32 %v697_v62, %v612_v34  ;;  %v216_v1 = vpop.f32.mrb[9].mxu0 }
 0x186   :  { %v217_v3 = vadd.f32 %v612_v34, %v216_v1  ;;  %v698_v4 = vpop.f32.mrb[10].mxu0  ;;  %711 = vmatprep.mubr.msk.bf16.mxu1 %vm294_vm3, %v265_v63 }
 0x187   :  { %v228_v5 = vadd.f32 %v698_v4, %v612_v34  ;;  %v219_v6 = vpop.f32.mrb[11].mxu0  ;;  %712 = vmatmul.mubr.msk.bf16.vlgmr.msra.gmra.mrb[0].mxu1 %vm294_vm3, %v266_v61  ;;  %v257_v8 = vmax.f32 %v225_v0, 0.0 }
 0x188   :  { %v220_v7 = vadd.f32 %v612_v34, %v219_v6  ;;  %724 = vmatpush3.bf16.msra.mxu1 %v764_v33  ;;  %v255_v10 = vmax.f32 %v217_v3, 0.0 }
 0x189   :  { %v258_v9 = vmax.f32 %v228_v5, 0.0  ;;  %725 = vmatprep.subr.bf16.mxu1 %v765_v2 }
 0x18a   :  { %v256_v11 = vmax.f32 %v220_v7, 0.0 }
 0x18b   :  { %v268_v12 = vpack.c.bf16 %v258_v9, %v257_v8 }
 0x18c   :  { %v267_v13 = vpack.c.bf16 %v256_v11, %v255_v10  ;;  %v701_v14 = vpop.f32.mrb[12].mxu0  ;;  %726 = vmatpush3.bf16.msra.mxu1 %v765_v2 }
 0x18d   :  { %v241_v15 = vadd.f32 %v701_v14, %v612_v34  ;;  %v232_v16 = vpop.f32.mrb[13].mxu0 }
 0x18e   :  { %v233_v17 = vadd.f32 %v612_v34, %v232_v16  ;;  %v702_v18 = vpop.f32.mrb[14].mxu0  ;;  %715 = vmatprep.mubr.msk.bf16.mxu1 %vm294_vm3, %v267_v13 }
 0x18f   :  { %v244_v19 = vadd.f32 %v702_v18, %v612_v34  ;;  %v235_v20 = vpop.f32.mrb[15].mxu0  ;;  %716 = vmatmul.mubr.msk.bf16.gmra.mrb[4].mxu1 %vm294_vm3, %v268_v12  ;;  %v261_v22 = vmax.f32 %v241_v15, 0.0 }
 0x190   :  { %v236_v21 = vadd.f32 %v612_v34, %v235_v20  ;;  %v259_v24 = vmax.f32 %v233_v17, 0.0 }
 0x191   :  { %v262_v23 = vmax.f32 %v244_v19, 0.0 }
 0x192   :  { %v260_v25 = vmax.f32 %v236_v21, 0.0  ;;  %v636_v21 = vld [vmem:[%s977_s8] ss:$0 sm:$0xff] }
 0x193   :  { %v270_v26 = vpack.c.bf16 %v262_v23, %v261_v22 }
 0x194   :  { %v269_v27 = vpack.c.bf16 %v260_v25, %v259_v24 }
 0x196   :  { %719 = vmatprep.mubr.msk.bf16.mxu1 %vm294_vm3, %v269_v27 }
 0x197   :  { %720 = vmatmul.mubr.msk.bf16.gmra.mrb[8].mxu1 %vm294_vm3, %v270_v26 }
 0x252   :  { %v709_v29 = vpop.f32.mrb[16].mxu0 }
 0x253   :  { %v362_v30 = vadd.f32 %v709_v29, %v625_v28  ;;  %v353_v31 = vpop.f32.mrb[17].mxu0 }
 0x254   :  { %v354_v32 = vadd.f32 %v625_v28, %v353_v31  ;;  %v710_v33 = vpop.f32.mrb[18].mxu0 }
 0x255   :  { %v365_v34 = vadd.f32 %v710_v33, %v625_v28  ;;  %v356_v35 = vpop.f32.mrb[19].mxu0  ;;  %v418_v37 = vmax.f32 %v362_v30, 0.0 }
 0x256   :  { %v357_v36 = vadd.f32 %v625_v28, %v356_v35  ;;  %v416_v39 = vmax.f32 %v354_v32, 0.0 }
 0x257   :  { %v419_v38 = vmax.f32 %v365_v34, 0.0 }
 0x258   :  { %v417_v40 = vmax.f32 %v357_v36, 0.0 }
 0x259   :  { %v433_v41 = vpack.c.bf16 %v419_v38, %v418_v37 }
 0x25a   :  { %v432_v42 = vpack.c.bf16 %v417_v40, %v416_v39  ;;  %v713_v43 = vpop.f32.mrb[0].mxu1 }
 0x25b   :  { %v378_v44 = vadd.f32 %v713_v43, %v625_v28  ;;  %v369_v45 = vpop.f32.mrb[1].mxu1 }
 0x25c   :  { %v370_v46 = vadd.f32 %v625_v28, %v369_v45  ;;  %v714_v47 = vpop.f32.mrb[2].mxu1  ;;  %727 = vmatprep.mubr.msk.bf16.mxu1 %vm294_vm3, %v432_v42 }
 0x25d   :  { %v381_v48 = vadd.f32 %v714_v47, %v625_v28  ;;  %v372_v49 = vpop.f32.mrb[3].mxu1  ;;  %728 = vmatmul.mubr.msk.bf16.vlgmr.msra.gmra.mrb[12].mxu1 %vm294_vm3, %v433_v41  ;;  %v422_v51 = vmax.f32 %v378_v44, 0.0 }
 0x25e   :  { %v373_v50 = vadd.f32 %v625_v28, %v372_v49  ;;  %v420_v53 = vmax.f32 %v370_v46, 0.0 }
 0x25f   :  { %v423_v52 = vmax.f32 %v381_v48, 0.0 }
 0x260   :  { %v421_v54 = vmax.f32 %v373_v50, 0.0 }
 0x261   :  { %v435_v55 = vpack.c.bf16 %v423_v52, %v422_v51 }
 0x262   :  { %v434_v56 = vpack.c.bf16 %v421_v54, %v420_v53  ;;  %v717_v57 = vpop.f32.mrb[4].mxu1 }
 0x263   :  { %v394_v58 = vadd.f32 %v717_v57, %v625_v28  ;;  %v385_v59 = vpop.f32.mrb[5].mxu1 }
 0x264   :  { %v386_v60 = vadd.f32 %v625_v28, %v385_v59  ;;  %v718_v61 = vpop.f32.mrb[6].mxu1  ;;  %731 = vmatprep.mubr.msk.bf16.mxu1 %vm294_vm3, %v434_v56 }
 0x265   :  { %v397_v62 = vadd.f32 %v718_v61, %v625_v28  ;;  %v388_v63 = vpop.f32.mrb[7].mxu1  ;;  %732 = vmatmul.mubr.msk.bf16.gmra.mrb[16].mxu1 %vm294_vm3, %v435_v55  ;;  %v426_v1 = vmax.f32 %v394_v58, 0.0 }
 0x266   :  { %v389_v0 = vadd.f32 %v625_v28, %v388_v63  ;;  %v424_v3 = vmax.f32 %v386_v60, 0.0 }
 0x267   :  { %v427_v2 = vmax.f32 %v397_v62, 0.0 }
 0x268   :  { %v425_v4 = vmax.f32 %v389_v0, 0.0 }
 0x269   :  { %v437_v5 = vpack.c.bf16 %v427_v2, %v426_v1 }
 0x26a   :  { %v436_v6 = vpack.c.bf16 %v425_v4, %v424_v3  ;;  %v721_v7 = vpop.f32.mrb[8].mxu1 }
 0x26b   :  { %v410_v8 = vadd.f32 %v721_v7, %v625_v28  ;;  %v401_v9 = vpop.f32.mrb[9].mxu1 }
 0x26c   :  { %v402_v10 = vadd.f32 %v625_v28, %v401_v9  ;;  %v722_v11 = vpop.f32.mrb[10].mxu1  ;;  %735 = vmatprep.mubr.msk.bf16.mxu1 %vm294_vm3, %v436_v6 }
 0x26d   :  { %v413_v12 = vadd.f32 %v722_v11, %v625_v28  ;;  %v404_v13 = vpop.f32.mrb[11].mxu1  ;;  %736 = vmatmul.mubr.msk.bf16.gmra.mrb[20].mxu1 %vm294_vm3, %v437_v5  ;;  %v430_v15 = vmax.f32 %v410_v8, 0.0 }
 0x26e   :  { %v405_v14 = vadd.f32 %v625_v28, %v404_v13  ;;  %v428_v17 = vmax.f32 %v402_v10, 0.0 }
 0x26f   :  { %v431_v16 = vmax.f32 %v413_v12, 0.0 }
 0x270   :  { %v429_v18 = vmax.f32 %v405_v14, 0.0 }
 0x271   :  { %v439_v19 = vpack.c.bf16 %v431_v16, %v430_v15 }
 0x272   :  { %v438_v20 = vpack.c.bf16 %v429_v18, %v428_v17 }
 0x274   :  { %739 = vmatprep.mubr.msk.bf16.mxu1 %vm294_vm3, %v438_v20 }
 0x275   :  { %740 = vmatmul.mubr.msk.bf16.gmra.mrb[24].mxu1 %vm294_vm3, %v439_v19 }
 0x330   :  { %v729_v22 = vpop.f32.mrb[12].mxu1 }
 0x331   :  { %v530_v23 = vadd.f32 %v729_v22, %v636_v21  ;;  %v521_v24 = vpop.f32.mrb[13].mxu1 }
 0x332   :  { %v522_v25 = vadd.f32 %v636_v21, %v521_v24  ;;  %v730_v26 = vpop.f32.mrb[14].mxu1 }
 0x333   :  { %586 = vst [vmem:[%s978_s9 + $0x10] sm:$0xff] %v530_v23  ;;  %v533_v27 = vadd.f32 %v730_v26, %v636_v21  ;;  %v524_v28 = vpop.f32.mrb[15].mxu1 }
 0x334   :  { %584 = vst [vmem:[%s978_s9] sm:$0xff] %v522_v25  ;;  %v525_v29 = vadd.f32 %v636_v21, %v524_v28 }
 0x335   :  { %587 = vst [vmem:[%s978_s9 + $0x18] sm:$0xff] %v533_v27 }
 0x336   :  { %585 = vst [vmem:[%s978_s9 + $0x8] sm:$0xff] %v525_v29 }
 0x338   :  { %v733_v30 = vpop.f32.mrb[16].mxu1 }
 0x339   :  { %v546_v31 = vadd.f32 %v733_v30, %v636_v21  ;;  %v537_v32 = vpop.f32.mrb[17].mxu1 }
 0x33a   :  { %v538_v33 = vadd.f32 %v636_v21, %v537_v32  ;;  %v734_v34 = vpop.f32.mrb[18].mxu1 }
 0x33b   :  { %590 = vst [vmem:[%s978_s9 + $0x30] sm:$0xff] %v546_v31  ;;  %v549_v35 = vadd.f32 %v734_v34, %v636_v21  ;;  %v540_v36 = vpop.f32.mrb[19].mxu1 }
 0x33c   :  { %588 = vst [vmem:[%s978_s9 + $0x20] sm:$0xff] %v538_v33  ;;  %v541_v37 = vadd.f32 %v636_v21, %v540_v36 }
 0x33d   :  { %591 = vst [vmem:[%s978_s9 + $0x38] sm:$0xff] %v549_v35 }
 0x33e   :  { %589 = vst [vmem:[%s978_s9 + $0x28] sm:$0xff] %v541_v37 }
 0x340   :  { %v737_v38 = vpop.f32.mrb[20].mxu1 }
 0x341   :  { %v562_v39 = vadd.f32 %v737_v38, %v636_v21  ;;  %v553_v40 = vpop.f32.mrb[21].mxu1 }
 0x342   :  { %v554_v41 = vadd.f32 %v636_v21, %v553_v40  ;;  %v738_v42 = vpop.f32.mrb[22].mxu1 }
 0x343   :  { %594 = vst [vmem:[%s978_s9 + $0x50] sm:$0xff] %v562_v39  ;;  %v565_v43 = vadd.f32 %v738_v42, %v636_v21  ;;  %v556_v44 = vpop.f32.mrb[23].mxu1 }
 0x344   :  { %592 = vst [vmem:[%s978_s9 + $0x40] sm:$0xff] %v554_v41  ;;  %v557_v45 = vadd.f32 %v636_v21, %v556_v44 }
 0x345   :  { %595 = vst [vmem:[%s978_s9 + $0x58] sm:$0xff] %v565_v43 }
 0x346   :  { %593 = vst [vmem:[%s978_s9 + $0x48] sm:$0xff] %v557_v45 }
 0x348   :  { %v741_v46 = vpop.f32.mrb[24].mxu1 }
 0x349   :  { %v578_v47 = vadd.f32 %v741_v46, %v636_v21  ;;  %v569_v48 = vpop.f32.mrb[25].mxu1 }
 0x34a   :  { %v570_v49 = vadd.f32 %v636_v21, %v569_v48  ;;  %v742_v50 = vpop.f32.mrb[26].mxu1 }
 0x34b   :  { %598 = vst [vmem:[%s978_s9 + $0x70] sm:$0xff] %v578_v47  ;;  %v581_v51 = vadd.f32 %v742_v50, %v636_v21  ;;  %v572_v52 = vpop.f32.mrb[27].mxu1 }
 0x34c   :  { %596 = vst [vmem:[%s978_s9 + $0x60] sm:$0xff] %v570_v49  ;;  %v573_v53 = vadd.f32 %v636_v21, %v572_v52 }
 0x34d   :  { %599 = vst [vmem:[%s978_s9 + $0x78] sm:$0xff] %v581_v51 }
 0x34e   :  { %597 = vst [vmem:[%s978_s9 + $0x68] sm:$0xff] %v573_v53 }

</bundles_post_ra>
